<compile_context>
chip_gen: v7x
topology: tpu7x:2x2x1
jax: 0.10.0
libtpu: 0.0.40
codegen_flags: <defaults>
</compile_context>

<pallas_src>
import jax
import jax.numpy as jnp
from jax import lax
from jax.experimental import pallas as pl
from jax.experimental.pallas import tpu as pltpu

_SIGMAINV = 7000.0   # DIB-R soft-rasterizer sharpness (1/sigma)


def _round_up(x, m):
    return ((x + m - 1) // m) * m


# ----------------------------------------------------------------------------
# Pallas kernel 1: linear rasterizer
#   grid = (B, pixel_tiles, face_tiles)   face axis last / "arbitrary"
#   outputs channel-planar: imfeat (B, 8, HWp), improb (B, 1, HWp)
# ----------------------------------------------------------------------------
def _raster_kernel(px_ref, py_ref, p2d_ref, zv_ref, nz_ref, ftT_ref,
                   imfeat_ref, improb_ref, bestz_ref, keep_ref):
    f_step = pl.program_id(2)
    nf = pl.num_programs(2)

    @pl.when(f_step == 0)
    def _init():
        bestz_ref[...] = jnp.full(bestz_ref.shape, -1e30, jnp.float32)
        keep_ref[...] = jnp.ones(keep_ref.shape, jnp.float32)
        imfeat_ref[...] = jnp.zeros(imfeat_ref.shape, jnp.float32)

    px = px_ref[...]            # (1, P_TILE) pixel x in NDC
    py = py_ref[...]            # (1, P_TILE) pixel y in NDC
    p2d = p2d_ref[0]            # (F_TILE, 6) projected 2-D vertices
    zv = zv_ref[0]              # (F_TILE, 3) camera-space z per vertex
    nz = nz_ref[0]              # (F_TILE, 1) face-normal z (front-face test)
    ftT = ftT_ref[0]            # (24, F_TILE) per-vertex features (3 x 8 rows)

    Ft = p2d.shape[0]
    Pt = px.shape[1]

    x0, y0 = p2d[:, 0:1], p2d[:, 1:2]
    x1, y1 = p2d[:, 2:3], p2d[:, 3:4]
    x2, y2 = p2d[:, 4:5], p2d[:, 5:6]

    ax, ay = x1 - x0, y1 - y0
    bx, by = x2 - x0, y2 - y0
    det = ax * by - bx * ay                                     # (F_TILE, 1)
    det = jnp.where(jnp.abs(det) < 1e-10,
                    jnp.where(det >= 0.0, 1e-10, -1e-10), det)  # sign-preserving clamp
    invdet = 1.0 / det                                          # per-face reciprocal

    dx = px - x0                                                # (F_TILE, P_TILE)
    dy = py - y0
    w1 = (dx * by - bx * dy) * invdet
    w2 = (ax * dy - dx * ay) * invdet
    w0 = 1.0 - w1 - w2

    front = nz > 0.0                                            # (F_TILE, 1)
    inside = (w0 >= 0.0) & (w1 >= 0.0) & (w2 >= 0.0)
    valid = inside & front

    # z-buffer: camera looks down -z, larger z == closer
    z = w0 * zv[:, 0:1] + w1 * zv[:, 1:2] + w2 * zv[:, 2:3]
    zmask = jnp.where(valid, z, -1e30)
    chunk_best = jnp.max(zmask, axis=0, keepdims=True)          # (1, P_TILE)

    # within-chunk tie-break: lowest face index wins
    fidx = lax.broadcasted_iota(jnp.int32, (Ft, Pt), 0).astype(jnp.float32)
    is_best = valid & (zmask >= chunk_best)
    first = jnp.min(jnp.where(is_best, fidx, float(Ft)), axis=0, keepdims=True)
    winner = (is_best & (fidx == first)).astype(jnp.float32)    # (F_TILE, P_TILE)

    # winning-face feature interpolation on the MXU: (8,F) @ (F,P) per vertex
    ft0 = ftT[0:8, :]
    ft1 = ftT[8:16, :]
    ft2 = ftT[16:24, :]
    chunk_feat = (jnp.dot(ft0, winner * w0, preferred_element_type=jnp.float32)
                  + jnp.dot(ft1, winner * w1, preferred_element_type=jnp.float32)
                  + jnp.dot(ft2, winner * w2, preferred_element_type=jnp.float32))

    # cross-chunk z-buffer update (strict '>' keeps earlier/lower face index on ties)
    update = chunk_best > bestz_ref[...]                        # (1, P_TILE)
    bestz_ref[...] = jnp.maximum(bestz_ref[...], chunk_best)
    imfeat_ref[0] = jnp.where(update, chunk_feat, imfeat_ref[0])

    # soft coverage: running product of (1 - prob) over face chunks
    # TODO(synk): DIB-R uses exact pixel-to-edge screen distance in CUDA;
    #             approximated here with barycentric "outside-ness".
    dist = jnp.maximum(0.0, -jnp.minimum(jnp.minimum(w0, w1), w2))
    prob = jnp.where(front, jnp.exp(-dist * dist * _SIGMAINV), 0.0)
    keep = 1.0 - prob                                           # (F_TILE, P_TILE)
    n = Ft
    while n > 8:                                                # sublane tree product
        h = n // 2
        keep = keep[:h, :] * keep[h:n, :]
        n = h
    keep_ref[...] = keep_ref[...] * keep                        # (8, P_TILE) accumulator

    @pl.when(f_step == nf - 1)
    def _finalize():
        kk = keep_ref[...]
        logk = jnp.sum(jnp.log(jnp.maximum(kk, 1e-20)), axis=0, keepdims=True)
        improb_ref[0] = 1.0 - jnp.exp(logk)


def rasterize(width, height, points2d_bxfx6, zvert_bxfx3, normalz_bxfx1, feat_bxfxd):
    B, Fn, _ = points2d_bxfx6.shape
    HW = height * width

    # ---- tiling constants (lane-dense pixel tiles, sublane face chunks) ----
    P_TILE = 1024
    f_tile = 8
    while f_tile < 128 and f_tile < Fn:
        f_tile *= 2
    F_TILE = f_tile
    Fp = _round_up(Fn, F_TILE)
    HWp = _round_up(HW, P_TILE)

    # ---- pad faces (padded faces are back-facing -> no contribution) ----
    pad_f = Fp - Fn
    p2d = jnp.pad(points2d_bxfx6, ((0, 0), (0, pad_f), (0, 0)))
    zv = jnp.pad(zvert_bxfx3, ((0, 0), (0, pad_f), (0, 0)))
    nzp = jnp.pad(normalz_bxfx1, ((0, 0), (0, pad_f), (0, 0)), constant_values=-1.0)

    # per-vertex features: (B,F,3,6) -> channel-pad to 8 -> (B, 24, Fp)
    feat = feat_bxfxd.reshape(B, Fn, 3, 6)
    feat = jnp.pad(feat, ((0, 0), (0, pad_f), (0, 0), (0, 2)))
    ftT = jnp.transpose(feat, (0, 2, 3, 1)).reshape(B, 24, Fp)

    # ---- pixel-center NDC coordinates, flattened & padded ----
    pix = jnp.arange(HWp, dtype=jnp.int32)
    ix = (pix % width).astype(jnp.float32)
    iy = (pix // width).astype(jnp.float32)
    px = (-1.0 + (2.0 * ix + 1.0) / width).reshape(1, HWp)
    py = (1.0 - (2.0 * iy + 1.0) / height).reshape(1, HWp)

    imfeat_p, improb_p = pl.pallas_call(
        _raster_kernel,
        out_shape=(jax.ShapeDtypeStruct((B, 8, HWp), jnp.float32),
                   jax.ShapeDtypeStruct((B, 1, HWp), jnp.float32)),
        grid=(B, HWp // P_TILE, Fp // F_TILE),
        in_specs=[
            pl.BlockSpec((1, P_TILE), lambda b, p, f: (0, p)),
            pl.BlockSpec((1, P_TILE), lambda b, p, f: (0, p)),
            pl.BlockSpec((1, F_TILE, 6), lambda b, p, f: (b, f, 0)),
            pl.BlockSpec((1, F_TILE, 3), lambda b, p, f: (b, f, 0)),
            pl.BlockSpec((1, F_TILE, 1), lambda b, p, f: (b, f, 0)),
            pl.BlockSpec((1, 24, F_TILE), lambda b, p, f: (b, 0, f)),
        ],
        out_specs=(pl.BlockSpec((1, 8, P_TILE), lambda b, p, f: (b, 0, p)),
                   pl.BlockSpec((1, 1, P_TILE), lambda b, p, f: (b, 0, p))),
        scratch_shapes=[pltpu.VMEM((1, P_TILE), jnp.float32),   # running best z
                        pltpu.VMEM((8, P_TILE), jnp.float32)],  # coverage product
        compiler_params=pltpu.CompilerParams(
            dimension_semantics=("parallel", "parallel", "arbitrary"),
            vmem_limit_bytes=64 * 1024 * 1024),
    )(px, py, p2d, zv, nzp, ftT)
    return imfeat_p, improb_p, HWp


# ----------------------------------------------------------------------------
# Pallas kernel 2: SH fragment shader on planar (C, rows, 128) slabs
# ----------------------------------------------------------------------------
def _shader_kernel(light_ref, imfeat_ref, tex_ref, out_ref):
    b = pl.program_id(0)
    feat = imfeat_ref[0]                     # (8, R_TILE, 128)
    nx, ny, nzc = feat[0], feat[1], feat[2]
    mask = feat[5]

    inv = lax.rsqrt(nx * nx + ny * ny + nzc * nzc + 1e-30)
    x = nx * inv
    y = ny * inv
    z = nzc * inv

    l0 = light_ref[b, 0]
    l1 = light_ref[b, 1]
    l2 = light_ref[b, 2]
    l3 = light_ref[b, 3]
    l4 = light_ref[b, 4]
    l5 = light_ref[b, 5]
    l6 = light_ref[b, 6]
    l7 = light_ref[b, 7]
    l8 = light_ref[b, 8]

    # 9 real spherical-harmonics bands as a scalar FMA chain (full-width VPU)
    coef = (0.282095 * l0
            + 0.488603 * l1 * y + 0.488603 * l2 * z + 0.488603 * l3 * x
            + 1.092548 * l4 * (x * y) + 1.092548 * l5 * (y * z)
            + 0.315392 * l6 * (3.0 * z * z - 1.0)
            + 1.092548 * l7 * (x * z) + 0.546274 * l8 * (x * x - y * y))
    cm = coef * mask

    tex = tex_ref[0]                         # (3, R_TILE, 128)
    out_ref[0, 0] = jnp.clip(cm * tex[0], 0.0, 1.0)
    out_ref[0, 1] = jnp.clip(cm * tex[1], 0.0, 1.0)
    out_ref[0, 2] = jnp.clip(cm * tex[2], 0.0, 1.0)


def sh_fragment_shade(imfeat_p, lightparam_bx9, texcolor_p):
    B, _, HWp = imfeat_p.shape
    R = HWp // 128
    r_tile = 8
    while r_tile < 64 and R % (r_tile * 2) == 0:
        r_tile *= 2

    imfeat4 = imfeat_p.reshape(B, 8, R, 128)
    tex4 = texcolor_p.reshape(B, 3, R, 128)
    out4 = pl.pallas_call(
        _shader_kernel,
        out_shape=jax.ShapeDtypeStruct((B, 3, R, 128), jnp.float32),
        grid=(B, R // r_tile),
        in_specs=[
            pl.BlockSpec(memory_space=pltpu.MemorySpace.SMEM),   # light params (B, 9)
            pl.BlockSpec((1, 8, r_tile, 128), lambda b, r: (b, 0, r, 0)),
            pl.BlockSpec((1, 3, r_tile, 128), lambda b, r: (b, 0, r, 0)),
        ],
        out_specs=pl.BlockSpec((1, 3, r_tile, 128), lambda b, r: (b, 0, r, 0)),
        compiler_params=pltpu.CompilerParams(
            dimension_semantics=("parallel", "parallel"),
            vmem_limit_bytes=64 * 1024 * 1024),
    )(lightparam_bx9.astype(jnp.float32), imfeat4, tex4)
    return out4.reshape(B, 3, HWp)


# ----------------------------------------------------------------------------
# JAX glue (projection, feature packing, texture gather)
# ----------------------------------------------------------------------------
def datanormalize(x, axis):
    n = jnp.sqrt(jnp.sum(x * x, axis=axis, keepdims=True))
    return x / (n + 1e-15)


def perspective_projection(points_bxpx3, faces_fx3, cameras):
    camrot_bx3x3, campos_bx3, camproj_3x1 = cameras
    pts = points_bxpx3 - campos_bx3[:, None, :]
    pts = jnp.einsum("bpk,bjk->bpj", pts, camrot_bx3x3)       # points @ rot^T
    proj = camproj_3x1.reshape(1, 1, 3)
    xyz = pts * proj
    xy = xyz[..., 0:2] / xyz[..., 2:3]
    p0 = pts[:, faces_fx3[:, 0], :]
    p1 = pts[:, faces_fx3[:, 1], :]
    p2 = pts[:, faces_fx3[:, 2], :]
    points3d_bxfx9 = jnp.concatenate([p0, p1, p2], axis=2)
    u0 = xy[:, faces_fx3[:, 0], :]
    u1 = xy[:, faces_fx3[:, 1], :]
    u2 = xy[:, faces_fx3[:, 2], :]
    points2d_bxfx6 = jnp.concatenate([u0, u1, u2], axis=2)
    normal_bxfx3 = jnp.cross(p1 - p0, p2 - p0)
    return points3d_bxfx9, points2d_bxfx6, normal_bxfx3


def texture_bilinear(uv_bxhxwx2, texture_bx3xthxtw):
    # grid_sample-style bilinear fetch (uv in [0,1], v flipped), align_corners=True.
    # TODO(synk): gather-heavy texture sampling kept in plain JAX glue.
    B, C, TH, TW = texture_bx3xthxtw.shape
    tex = jnp.transpose(texture_bx3xthxtw, (0, 2, 3, 1))      # (B, TH, TW, C)
    u = jnp.clip(uv_bxhxwx2[..., 0], 0.0, 1.0)
    v = jnp.clip(uv_bxhxwx2[..., 1], 0.0, 1.0)
    tx = u * (TW - 1)
    ty = (1.0 - v) * (TH - 1)
    x0 = jnp.floor(tx)
    y0 = jnp.floor(ty)
    wx = (tx - x0)[..., None]
    wy = (ty - y0)[..., None]
    x0i = x0.astype(jnp.int32)
    y0i = y0.astype(jnp.int32)
    x1i = jnp.minimum(x0i + 1, TW - 1)
    y1i = jnp.minimum(y0i + 1, TH - 1)
    bidx = jnp.arange(B)[:, None, None]
    g00 = tex[bidx, y0i, x0i]
    g01 = tex[bidx, y0i, x1i]
    g10 = tex[bidx, y1i, x0i]
    g11 = tex[bidx, y1i, x1i]
    return ((1.0 - wy) * ((1.0 - wx) * g00 + wx * g01)
            + wy * ((1.0 - wx) * g10 + wx * g11))


def sh_render(points_bxpx3, faces_fx3, cameras, uv_bxpx2, texture_bx3xthxtw,
              lightparam_bx9, height, width, ft_fx3=None):
    assert lightparam_bx9 is not None
    if ft_fx3 is None:
        ft_fx3 = faces_fx3

    points3d_bxfx9, points2d_bxfx6, normal_bxfx3 = perspective_projection(
        points_bxpx3, faces_fx3, cameras)
    normalz_bxfx1 = normal_bxfx3[:, :, 2:3]
    normal1_bxfx3 = datanormalize(normal_bxfx3, axis=2)
    normal_bxfx9 = jnp.tile(normal_bxfx3, (1, 1, 3))          # smooth=False branch

    B, Fn = normal_bxfx3.shape[:2]
    c0 = uv_bxpx2[:, ft_fx3[:, 0], :]
    c1 = uv_bxpx2[:, ft_fx3[:, 1], :]
    c2 = uv_bxpx2[:, ft_fx3[:, 2], :]
    mask = jnp.ones_like(c0[:, :, :1])
    uv_bxfx3x3 = jnp.concatenate([c0, mask, c1, mask, c2, mask], axis=2).reshape(B, Fn, 3, 3)
    normal_bxfx3x3 = normal_bxfx9.reshape(B, Fn, 3, 3)
    feat = jnp.concatenate([normal_bxfx3x3, uv_bxfx3x3], axis=3).reshape(B, Fn, 18)

    zvert_bxfx3 = points3d_bxfx9[:, :, 2::3]                  # camera-space z per vertex
    imfeat_p, improb_p, HWp = rasterize(width, height, points2d_bxfx6,
                                        zvert_bxfx3, normalz_bxfx1, feat)

    HW = height * width
    # texture sampling from the planar UV channels (plain-JAX gather)
    u = imfeat_p[:, 3, :HW].reshape(B, height, width)
    v = imfeat_p[:, 4, :HW].reshape(B, height, width)
    uv_im = jnp.stack([u, v], axis=-1)
    texcolor = texture_bilinear(uv_im, texture_bx3xthxtw)                 # (B,H,W,3)
    texcolor_p = jnp.transpose(texcolor, (0, 3, 1, 2)).reshape(B, 3, HW)
    texcolor_p = jnp.pad(texcolor_p, ((0, 0), (0, 0), (0, HWp - HW)))

    imrender_p = sh_fragment_shade(imfeat_p, lightparam_bx9, texcolor_p)  # (B,3,HWp)
    imrender = jnp.transpose(imrender_p[:, :, :HW].reshape(B, 3, height, width),
                             (0, 2, 3, 1))
    improb = improb_p[:, 0, :HW].reshape(B, height, width, 1)
    hardmask = imfeat_p[:, 5, :HW].reshape(B, height, width, 1)
    return imrender, improb, normal1_bxfx3, hardmask


# ----------------------------------------------------------------------------
if __name__ == "__main__":
    key = jax.random.PRNGKey(0)
    kz, ktex, klight = jax.random.split(key, 3)

    B, H, W = 2, 16, 16
    TH = TW = 16
    gs = 3                                        # 3x3 vertex grid -> 8 faces

    xs = jnp.linspace(-0.6, 0.6, gs)
    gx, gy = jnp.meshgrid(xs, xs, indexing="xy")
    base2 = jnp.stack([gx.reshape(-1), gy.reshape(-1)], axis=-1)          # (P, 2)
    P = gs * gs
    zoff = 0.05 * jax.random.normal(kz, (B, P, 1), dtype=jnp.float32)
    points_bxpx3 = jnp.concatenate(
        [jnp.broadcast_to(base2, (B, P, 2)), zoff], axis=-1).astype(jnp.float32)

    faces = []
    for r in range(gs - 1):
        for c in range(gs - 1):
            i00 = r * gs + c
            i01, i10, i11 = i00 + 1, i00 + gs, i00 + gs + 1
            faces.append([i00, i01, i11])          # CCW -> front facing
            faces.append([i00, i11, i10])
    faces_fx3 = jnp.array(faces, dtype=jnp.int32)  # (8, 3)

    uv_bxpx2 = jnp.broadcast_to((base2 + 0.6) / 1.2, (B, P, 2)).astype(jnp.float32)
    texture_bx3xthxtw = jax.random.uniform(ktex, (B, 3, TH, TW), dtype=jnp.float32)
    lightparam_bx9 = jax.random.uniform(klight, (B, 9), dtype=jnp.float32)

    camrot = jnp.broadcast_to(jnp.eye(3, dtype=jnp.float32), (B, 3, 3))
    campos = jnp.tile(jnp.array([[0.0, 0.0, 2.5]], dtype=jnp.float32), (B, 1))
    camproj = jnp.array([[2.5], [2.5], [-1.0]], dtype=jnp.float32)

    imrender, improb, normal1, hardmask = sh_render(
        points_bxpx3, faces_fx3, (camrot, campos, camproj),
        uv_bxpx2, texture_bx3xthxtw, lightparam_bx9, height=H, width=W)
    jax.block_until_ready((imrender, improb, normal1, hardmask))

    assert imrender.shape == (B, H, W, 3)
    assert improb.shape == (B, H, W, 1)
    assert normal1.shape == (B, faces_fx3.shape[0], 3)
    assert hardmask.shape == (B, H, W, 1)
    print("KERNEL_OK")
</pallas_src>

<mosaic_0001>
module attributes {stable_mosaic.version = 11 : i64} {
  func.func @_raster_kernel(%arg0: i32, %arg1: i32, %arg2: i32, %arg3: memref<1x1024xf32, #tpu.memory_space<vmem>>, %arg4: memref<1x1024xf32, #tpu.memory_space<vmem>>, %arg5: memref<1x8x6xf32, #tpu.memory_space<vmem>>, %arg6: memref<1x8x3xf32, #tpu.memory_space<vmem>>, %arg7: memref<1x8x1xf32, #tpu.memory_space<vmem>>, %arg8: memref<1x24x8xf32, #tpu.memory_space<vmem>>, %arg9: memref<1x8x1024xf32, #tpu.memory_space<vmem>>, %arg10: memref<1x1x1024xf32, #tpu.memory_space<vmem>>, %arg11: memref<1x1024xf32, #tpu.memory_space<vmem>>, %arg12: memref<8x1024xf32, #tpu.memory_space<vmem>>) attributes {dimension_semantics = [#tpu.dimension_semantics<parallel>, #tpu.dimension_semantics<parallel>, #tpu.dimension_semantics<arbitrary>], iteration_bounds = array<i64: 2, 1, 1>, scalar_prefetch = 0 : i64, scratch_operands = 2 : i64, tpu.core_type = #tpu.core_type<tc>, window_params = [{transform_indices = @transform_0, window_bounds = array<i64: 1, 1024>}, {transform_indices = @transform_1, window_bounds = array<i64: 1, 1024>}, {transform_indices = @transform_2, window_bounds = array<i64: 1, 8, 6>}, {transform_indices = @transform_3, window_bounds = array<i64: 1, 8, 3>}, {transform_indices = @transform_4, window_bounds = array<i64: 1, 8, 1>}, {transform_indices = @transform_5, window_bounds = array<i64: 1, 24, 8>}, {transform_indices = @transform_6, window_bounds = array<i64: 1, 8, 1024>}, {transform_indices = @transform_7, window_bounds = array<i64: 1, 1, 1024>}]} {
    %c0_i32 = arith.constant 0 : i32
    %0 = arith.cmpi eq, %arg2, %c0_i32 : i32
    %1 = arith.extui %0 : i1 to i32
    %c0_i32_0 = arith.constant 0 : i32
    %2 = arith.cmpi ne, %1, %c0_i32_0 : i32
    scf.if %2 {
      %cst_56 = arith.constant -1.000000e+30 : f32
      %149 = vector.broadcast %cst_56 : f32 to vector<1x1024xf32>
      %c0_57 = arith.constant 0 : index
      %c0_58 = arith.constant 0 : index
      %150 = vector.load %arg11[%c0_57, %c0_58] : memref<1x1024xf32, #tpu.memory_space<vmem>>, vector<1x1024xf32>
      tpu.vector_store %arg11[%c0_57, %c0_58], %149 {strides = array<i32>} : memref<1x1024xf32, #tpu.memory_space<vmem>>, vector<1x1024xf32>,
      %cst_59 = arith.constant 1.000000e+00 : f32
      %151 = vector.broadcast %cst_59 : f32 to vector<8x1024xf32>
      %c0_60 = arith.constant 0 : index
      %c0_61 = arith.constant 0 : index
      %152 = vector.load %arg12[%c0_60, %c0_61] : memref<8x1024xf32, #tpu.memory_space<vmem>>, vector<8x1024xf32>
      tpu.vector_store %arg12[%c0_60, %c0_61], %151 {strides = array<i32>} : memref<8x1024xf32, #tpu.memory_space<vmem>>, vector<8x1024xf32>,
      %cst_62 = arith.constant 0.000000e+00 : f32
      %153 = vector.broadcast %cst_62 : f32 to vector<1x8x1024xf32>
      %c0_63 = arith.constant 0 : index
      %c0_64 = arith.constant 0 : index
      %c0_65 = arith.constant 0 : index
      %154 = vector.load %arg9[%c0_63, %c0_64, %c0_65] : memref<1x8x1024xf32, #tpu.memory_space<vmem>>, vector<1x8x1024xf32>
      tpu.vector_store %arg9[%c0_63, %c0_64, %c0_65], %153 {strides = array<i32>} : memref<1x8x1024xf32, #tpu.memory_space<vmem>>, vector<1x8x1024xf32>,
    } else {
    }
    %c0 = arith.constant 0 : index
    %c0_1 = arith.constant 0 : index
    %3 = vector.load %arg3[%c0, %c0_1] : memref<1x1024xf32, #tpu.memory_space<vmem>>, vector<1x1024xf32>
    %c0_2 = arith.constant 0 : index
    %c0_3 = arith.constant 0 : index
    %4 = vector.load %arg4[%c0_2, %c0_3] : memref<1x1024xf32, #tpu.memory_space<vmem>>, vector<1x1024xf32>
    %c0_4 = arith.constant 0 : index
    %c0_5 = arith.constant 0 : index
    %c0_6 = arith.constant 0 : index
    %5 = vector.load %arg5[%c0_4, %c0_5, %c0_6] : memref<1x8x6xf32, #tpu.memory_space<vmem>>, vector<1x8x6xf32>
    %6 = vector.shape_cast %5 : vector<1x8x6xf32> to vector<8x6xf32>
    %c0_7 = arith.constant 0 : index
    %c0_8 = arith.constant 0 : index
    %c0_9 = arith.constant 0 : index
    %7 = vector.load %arg6[%c0_7, %c0_8, %c0_9] : memref<1x8x3xf32, #tpu.memory_space<vmem>>, vector<1x8x3xf32>
    %8 = vector.shape_cast %7 : vector<1x8x3xf32> to vector<8x3xf32>
    %c0_10 = arith.constant 0 : index
    %c0_11 = arith.constant 0 : index
    %c0_12 = arith.constant 0 : index
    %9 = vector.load %arg7[%c0_10, %c0_11, %c0_12] : memref<1x8x1xf32, #tpu.memory_space<vmem>>, vector<1x8x1xf32>
    %10 = vector.shape_cast %9 : vector<1x8x1xf32> to vector<8x1xf32>
    %c0_13 = arith.constant 0 : index
    %c0_14 = arith.constant 0 : index
    %c0_15 = arith.constant 0 : index
    %11 = vector.load %arg8[%c0_13, %c0_14, %c0_15] : memref<1x24x8xf32, #tpu.memory_space<vmem>>, vector<1x24x8xf32>
    %12 = vector.shape_cast %11 : vector<1x24x8xf32> to vector<24x8xf32>
    %13 = vector.extract_strided_slice %6 {offsets = [0, 0], sizes = [8, 1], strides = [1, 1]} : vector<8x6xf32> to vector<8x1xf32>
    %14 = vector.extract_strided_slice %6 {offsets = [0, 1], sizes = [8, 1], strides = [1, 1]} : vector<8x6xf32> to vector<8x1xf32>
    %15 = vector.extract_strided_slice %6 {offsets = [0, 2], sizes = [8, 1], strides = [1, 1]} : vector<8x6xf32> to vector<8x1xf32>
    %16 = vector.extract_strided_slice %6 {offsets = [0, 3], sizes = [8, 1], strides = [1, 1]} : vector<8x6xf32> to vector<8x1xf32>
    %17 = vector.extract_strided_slice %6 {offsets = [0, 4], sizes = [8, 1], strides = [1, 1]} : vector<8x6xf32> to vector<8x1xf32>
    %18 = vector.extract_strided_slice %6 {offsets = [0, 5], sizes = [8, 1], strides = [1, 1]} : vector<8x6xf32> to vector<8x1xf32>
    %19 = arith.subf %15, %13 : vector<8x1xf32>
    %20 = arith.subf %16, %14 : vector<8x1xf32>
    %21 = arith.subf %17, %13 : vector<8x1xf32>
    %22 = arith.subf %18, %14 : vector<8x1xf32>
    %23 = arith.mulf %19, %22 : vector<8x1xf32>
    %24 = arith.mulf %21, %20 : vector<8x1xf32>
    %25 = arith.subf %23, %24 : vector<8x1xf32>
    %26 = math.absf %25 : vector<8x1xf32>
    %cst = arith.constant 1.000000e-10 : f32
    %27 = vector.broadcast %cst : f32 to vector<8x1xf32>
    %28 = arith.cmpf olt, %26, %27 : vector<8x1xf32>
    %cst_16 = arith.constant 0.000000e+00 : f32
    %29 = vector.broadcast %cst_16 : f32 to vector<8x1xf32>
    %30 = arith.cmpf oge, %25, %29 : vector<8x1xf32>
    %cst_17 = arith.constant 1.000000e-10 : f32
    %cst_18 = arith.constant -1.000000e-10 : f32
    %31 = vector.broadcast %cst_17 : f32 to vector<8x1xf32>
    %32 = vector.broadcast %cst_18 : f32 to vector<8x1xf32>
    %33 = arith.select %30, %31, %32 : vector<8x1xi1>, vector<8x1xf32>
    %34 = arith.select %28, %33, %25 : vector<8x1xi1>, vector<8x1xf32>
    %cst_19 = arith.constant 1.000000e+00 : f32
    %35 = vector.broadcast %cst_19 : f32 to vector<8x1xf32>
    %36 = arith.divf %35, %34 : vector<8x1xf32>
    %37 = vector.broadcast %3 : vector<1x1024xf32> to vector<8x1024xf32>
    %38 = vector.broadcast %13 : vector<8x1xf32> to vector<8x1024xf32>
    %39 = arith.subf %37, %38 : vector<8x1024xf32>
    %40 = vector.broadcast %4 : vector<1x1024xf32> to vector<8x1024xf32>
    %41 = vector.broadcast %14 : vector<8x1xf32> to vector<8x1024xf32>
    %42 = arith.subf %40, %41 : vector<8x1024xf32>
    %43 = vector.broadcast %22 : vector<8x1xf32> to vector<8x1024xf32>
    %44 = arith.mulf %39, %43 : vector<8x1024xf32>
    %45 = vector.broadcast %21 : vector<8x1xf32> to vector<8x1024xf32>
    %46 = arith.mulf %45, %42 : vector<8x1024xf32>
    %47 = arith.subf %44, %46 : vector<8x1024xf32>
    %48 = vector.broadcast %36 : vector<8x1xf32> to vector<8x1024xf32>
    %49 = arith.mulf %47, %48 : vector<8x1024xf32>
    %50 = vector.broadcast %19 : vector<8x1xf32> to vector<8x1024xf32>
    %51 = arith.mulf %50, %42 : vector<8x1024xf32>
    %52 = vector.broadcast %20 : vector<8x1xf32> to vector<8x1024xf32>
    %53 = arith.mulf %39, %52 : vector<8x1024xf32>
    %54 = arith.subf %51, %53 : vector<8x1024xf32>
    %55 = vector.broadcast %36 : vector<8x1xf32> to vector<8x1024xf32>
    %56 = arith.mulf %54, %55 : vector<8x1024xf32>
    %cst_20 = arith.constant 1.000000e+00 : f32
    %57 = vector.broadcast %cst_20 : f32 to vector<8x1024xf32>
    %58 = arith.subf %57, %49 : vector<8x1024xf32>
    %59 = arith.subf %58, %56 : vector<8x1024xf32>
    %cst_21 = arith.constant 0.000000e+00 : f32
    %60 = vector.broadcast %cst_21 : f32 to vector<8x1xf32>
    %61 = arith.cmpf ogt, %10, %60 : vector<8x1xf32>
    %cst_22 = arith.constant 0.000000e+00 : f32
    %62 = vector.broadcast %cst_22 : f32 to vector<8x1024xf32>
    %63 = arith.cmpf oge, %59, %62 : vector<8x1024xf32>
    %cst_23 = arith.constant 0.000000e+00 : f32
    %64 = vector.broadcast %cst_23 : f32 to vector<8x1024xf32>
    %65 = arith.cmpf oge, %49, %64 : vector<8x1024xf32>
    %66 = arith.andi %63, %65 : vector<8x1024xi1>
    %cst_24 = arith.constant 0.000000e+00 : f32
    %67 = vector.broadcast %cst_24 : f32 to vector<8x1024xf32>
    %68 = arith.cmpf oge, %56, %67 : vector<8x1024xf32>
    %69 = arith.andi %66, %68 : vector<8x1024xi1>
    %70 = vector.broadcast %61 : vector<8x1xi1> to vector<8x1024xi1>
    %71 = arith.andi %69, %70 : vector<8x1024xi1>
    %72 = vector.extract_strided_slice %8 {offsets = [0, 0], sizes = [8, 1], strides = [1, 1]} : vector<8x3xf32> to vector<8x1xf32>
    %73 = vector.broadcast %72 : vector<8x1xf32> to vector<8x1024xf32>
    %74 = arith.mulf %59, %73 : vector<8x1024xf32>
    %75 = vector.extract_strided_slice %8 {offsets = [0, 1], sizes = [8, 1], strides = [1, 1]} : vector<8x3xf32> to vector<8x1xf32>
    %76 = vector.broadcast %75 : vector<8x1xf32> to vector<8x1024xf32>
    %77 = arith.mulf %49, %76 : vector<8x1024xf32>
    %78 = arith.addf %74, %77 : vector<8x1024xf32>
    %79 = vector.extract_strided_slice %8 {offsets = [0, 2], sizes = [8, 1], strides = [1, 1]} : vector<8x3xf32> to vector<8x1xf32>
    %80 = vector.broadcast %79 : vector<8x1xf32> to vector<8x1024xf32>
    %81 = arith.mulf %56, %80 : vector<8x1024xf32>
    %82 = arith.addf %78, %81 : vector<8x1024xf32>
    %cst_25 = arith.constant -1.000000e+30 : f32
    %83 = vector.broadcast %cst_25 : f32 to vector<8x1024xf32>
    %84 = arith.select %71, %82, %83 : vector<8x1024xi1>, vector<8x1024xf32>
    %cst_26 = arith.constant dense<0xFF800000> : vector<1024xf32>
    %85 = vector.multi_reduction <maximumf>, %84, %cst_26 [0] : vector<8x1024xf32> to vector<1024xf32>
    %86 = vector.shape_cast %85 : vector<1024xf32> to vector<1x1024xf32>
    %87 = tpu.iota {dimensions = array<i32: 0>} : vector<8x1024xi32>
    %88 = arith.sitofp %87 : vector<8x1024xi32> to vector<8x1024xf32>
    %89 = vector.broadcast %86 : vector<1x1024xf32> to vector<8x1024xf32>
    %90 = arith.cmpf oge, %84, %89 : vector<8x1024xf32>
    %91 = arith.andi %71, %90 : vector<8x1024xi1>
    %cst_27 = arith.constant 8.000000e+00 : f32
    %92 = vector.broadcast %cst_27 : f32 to vector<8x1024xf32>
    %93 = arith.select %91, %88, %92 : vector<8x1024xi1>, vector<8x1024xf32>
    %cst_28 = arith.constant dense<0x7F800000> : vector<1024xf32>
    %94 = vector.multi_reduction <minimumf>, %93, %cst_28 [0] : vector<8x1024xf32> to vector<1024xf32>
    %95 = vector.shape_cast %94 : vector<1024xf32> to vector<1x1024xf32>
    %96 = vector.broadcast %95 : vector<1x1024xf32> to vector<8x1024xf32>
    %97 = arith.cmpf oeq, %88, %96 : vector<8x1024xf32>
    %98 = arith.andi %91, %97 : vector<8x1024xi1>
    %99 = arith.extui %98 : vector<8x1024xi1> to vector<8x1024xi32>
    %100 = arith.sitofp %99 : vector<8x1024xi32> to vector<8x1024xf32>
    %101 = vector.extract_strided_slice %12 {offsets = [0, 0], sizes = [8, 8], strides = [1, 1]} : vector<24x8xf32> to vector<8x8xf32>
    %102 = vector.extract_strided_slice %12 {offsets = [8, 0], sizes = [8, 8], strides = [1, 1]} : vector<24x8xf32> to vector<8x8xf32>
    %103 = vector.extract_strided_slice %12 {offsets = [16, 0], sizes = [8, 8], strides = [1, 1]} : vector<24x8xf32> to vector<8x8xf32>
    %104 = arith.mulf %100, %59 : vector<8x1024xf32>
    %cst_29 = arith.constant dense<0.000000e+00> : vector<8x1024xf32>
    %105 = tpu.matmul %101, %104, %cst_29 {dimension_numbers = #tpu.dot_dimension_numbers<[1], [0], [0], [1], [0, 0, 1, 1], [], []>} : vector<8x8xf32>, vector<8x1024xf32>, vector<8x1024xf32> -> vector<8x1024xf32>
    %106 = arith.mulf %100, %49 : vector<8x1024xf32>
    %cst_30 = arith.constant dense<0.000000e+00> : vector<8x1024xf32>
    %107 = tpu.matmul %102, %106, %cst_30 {dimension_numbers = #tpu.dot_dimension_numbers<[1], [0], [0], [1], [0, 0, 1, 1], [], []>} : vector<8x8xf32>, vector<8x1024xf32>, vector<8x1024xf32> -> vector<8x1024xf32>
    %108 = arith.addf %105, %107 : vector<8x1024xf32>
    %109 = arith.mulf %100, %56 : vector<8x1024xf32>
    %cst_31 = arith.constant dense<0.000000e+00> : vector<8x1024xf32>
    %110 = tpu.matmul %103, %109, %cst_31 {dimension_numbers = #tpu.dot_dimension_numbers<[1], [0], [0], [1], [0, 0, 1, 1], [], []>} : vector<8x8xf32>, vector<8x1024xf32>, vector<8x1024xf32> -> vector<8x1024xf32>
    %111 = arith.addf %108, %110 : vector<8x1024xf32>
    %c0_32 = arith.constant 0 : index
    %c0_33 = arith.constant 0 : index
    %112 = vector.load %arg11[%c0_32, %c0_33] : memref<1x1024xf32, #tpu.memory_space<vmem>>, vector<1x1024xf32>
    %113 = arith.cmpf ogt, %86, %112 : vector<1x1024xf32>
    %c0_34 = arith.constant 0 : index
    %c0_35 = arith.constant 0 : index
    %114 = vector.load %arg11[%c0_34, %c0_35] : memref<1x1024xf32, #tpu.memory_space<vmem>>, vector<1x1024xf32>
    %115 = arith.maximumf %114, %86 : vector<1x1024xf32>
    %c0_36 = arith.constant 0 : index
    %c0_37 = arith.constant 0 : index
    %116 = vector.load %arg11[%c0_36, %c0_37] : memref<1x1024xf32, #tpu.memory_space<vmem>>, vector<1x1024xf32>
    tpu.vector_store %arg11[%c0_36, %c0_37], %115 {strides = array<i32>} : memref<1x1024xf32, #tpu.memory_space<vmem>>, vector<1x1024xf32>,
    %c0_38 = arith.constant 0 : index
    %c0_39 = arith.constant 0 : index
    %c0_40 = arith.constant 0 : index
    %117 = vector.load %arg9[%c0_38, %c0_39, %c0_40] : memref<1x8x1024xf32, #tpu.memory_space<vmem>>, vector<1x8x1024xf32>
    %118 = vector.shape_cast %117 : vector<1x8x1024xf32> to vector<8x1024xf32>
    %119 = vector.shape_cast %113 : vector<1x1024xi1> to vector<1x1024xi1>
    %120 = vector.broadcast %119 : vector<1x1024xi1> to vector<8x1024xi1>
    %121 = arith.select %120, %111, %118 : vector<8x1024xi1>, vector<8x1024xf32>
    %c0_41 = arith.constant 0 : index
    %c0_42 = arith.constant 0 : index
    %c0_43 = arith.constant 0 : index
    %122 = vector.load %arg9[%c0_41, %c0_42, %c0_43] : memref<1x8x1024xf32, #tpu.memory_space<vmem>>, vector<1x8x1024xf32>
    %123 = vector.shape_cast %122 : vector<1x8x1024xf32> to vector<8x1024xf32>
    %124 = vector.shape_cast %121 : vector<8x1024xf32> to vector<1x8x1024xf32>
    tpu.vector_store %arg9[%c0_41, %c0_42, %c0_43], %124 {strides = array<i32>} : memref<1x8x1024xf32, #tpu.memory_space<vmem>>, vector<1x8x1024xf32>,
    %125 = arith.minimumf %59, %49 : vector<8x1024xf32>
    %126 = arith.minimumf %125, %56 : vector<8x1024xf32>
    %cst_44 = arith.constant 0.000000e+00 : f32
    %127 = vector.broadcast %cst_44 : f32 to vector<8x1024xf32>
    %128 = arith.subf %127, %126 : vector<8x1024xf32>
    %cst_45 = arith.constant 0.000000e+00 : f32
    %129 = vector.broadcast %cst_45 : f32 to vector<8x1024xf32>
    %130 = arith.maximumf %129, %128 : vector<8x1024xf32>
    %cst_46 = arith.constant 0.000000e+00 : f32
    %131 = vector.broadcast %cst_46 : f32 to vector<8x1024xf32>
    %132 = arith.subf %131, %130 : vector<8x1024xf32>
    %133 = arith.mulf %132, %130 : vector<8x1024xf32>
    %cst_47 = arith.constant 7.000000e+03 : f32
    %134 = vector.broadcast %cst_47 : f32 to vector<8x1024xf32>
    %135 = arith.mulf %133, %134 : vector<8x1024xf32>
    %136 = math.exp %135 : vector<8x1024xf32>
    %cst_48 = arith.constant 0.000000e+00 : f32
    %137 = vector.shape_cast %61 : vector<8x1xi1> to vector<8x1xi1>
    %138 = vector.broadcast %137 : vector<8x1xi1> to vector<8x1024xi1>
    %139 = vector.broadcast %cst_48 : f32 to vector<8x1024xf32>
    %140 = arith.select %138, %136, %139 : vector<8x1024xi1>, vector<8x1024xf32>
    %cst_49 = arith.constant 1.000000e+00 : f32
    %141 = vector.broadcast %cst_49 : f32 to vector<8x1024xf32>
    %142 = arith.subf %141, %140 : vector<8x1024xf32>
    %c0_50 = arith.constant 0 : index
    %c0_51 = arith.constant 0 : index
    %143 = vector.load %arg12[%c0_50, %c0_51] : memref<8x1024xf32, #tpu.memory_space<vmem>>, vector<8x1024xf32>
    %144 = arith.mulf %143, %142 : vector<8x1024xf32>
    %c0_52 = arith.constant 0 : index
    %c0_53 = arith.constant 0 : index
    %145 = vector.load %arg12[%c0_52, %c0_53] : memref<8x1024xf32, #tpu.memory_space<vmem>>, vector<8x1024xf32>
    tpu.vector_store %arg12[%c0_52, %c0_53], %144 {strides = array<i32>} : memref<8x1024xf32, #tpu.memory_space<vmem>>, vector<8x1024xf32>,
    %c0_i32_54 = arith.constant 0 : i32
    %146 = arith.cmpi eq, %arg2, %c0_i32_54 : i32
    %147 = arith.extui %146 : i1 to i32
    %c0_i32_55 = arith.constant 0 : i32
    %148 = arith.cmpi ne, %147, %c0_i32_55 : i32
    scf.if %148 {
      %c0_56 = arith.constant 0 : index
      %c0_57 = arith.constant 0 : index
      %149 = vector.load %arg12[%c0_56, %c0_57] : memref<8x1024xf32, #tpu.memory_space<vmem>>, vector<8x1024xf32>
      %cst_58 = arith.constant 9.99999968E-21 : f32
      %150 = vector.broadcast %cst_58 : f32 to vector<8x1024xf32>
      %151 = arith.maximumf %149, %150 : vector<8x1024xf32>
      %152 = math.log %151 : vector<8x1024xf32>
      %cst_59 = arith.constant dense<0.000000e+00> : vector<1024xf32>
      %153 = vector.multi_reduction <add>, %152, %cst_59 [0] : vector<8x1024xf32> to vector<1024xf32>
      %154 = vector.shape_cast %153 : vector<1024xf32> to vector<1x1024xf32>
      %155 = math.exp %154 : vector<1x1024xf32>
      %cst_60 = arith.constant 1.000000e+00 : f32
      %156 = vector.broadcast %cst_60 : f32 to vector<1x1024xf32>
      %157 = arith.subf %156, %155 : vector<1x1024xf32>
      %c0_61 = arith.constant 0 : index
      %c0_62 = arith.constant 0 : index
      %c0_63 = arith.constant 0 : index
      %158 = vector.load %arg10[%c0_61, %c0_62, %c0_63] : memref<1x1x1024xf32, #tpu.memory_space<vmem>>, vector<1x1x1024xf32>
      %159 = vector.shape_cast %158 : vector<1x1x1024xf32> to vector<1x1024xf32>
      %160 = vector.shape_cast %157 : vector<1x1024xf32> to vector<1x1x1024xf32>
      tpu.vector_store %arg10[%c0_61, %c0_62, %c0_63], %160 {strides = array<i32>} : memref<1x1x1024xf32, #tpu.memory_space<vmem>>, vector<1x1x1024xf32>,
    } else {
    }
    return
  }
  func.func @transform_0(%arg0: i32, %arg1: i32, %arg2: i32) -> (i32, i32) {
    %c0_i32 = arith.constant 0 : i32
    %c0_i32_0 = arith.constant 0 : i32
    return %c0_i32, %arg1 : i32, i32
  }
  func.func @transform_1(%arg0: i32, %arg1: i32, %arg2: i32) -> (i32, i32) {
    %c0_i32 = arith.constant 0 : i32
    %c0_i32_0 = arith.constant 0 : i32
    return %c0_i32, %arg1 : i32, i32
  }
  func.func @transform_2(%arg0: i32, %arg1: i32, %arg2: i32) -> (i32, i32, i32) {
    %c0_i32 = arith.constant 0 : i32
    %c0_i32_0 = arith.constant 0 : i32
    return %arg0, %arg2, %c0_i32 : i32, i32, i32
  }
  func.func @transform_3(%arg0: i32, %arg1: i32, %arg2: i32) -> (i32, i32, i32) {
    %c0_i32 = arith.constant 0 : i32
    %c0_i32_0 = arith.constant 0 : i32
    return %arg0, %arg2, %c0_i32 : i32, i32, i32
  }
  func.func @transform_4(%arg0: i32, %arg1: i32, %arg2: i32) -> (i32, i32, i32) {
    %c0_i32 = arith.constant 0 : i32
    %c0_i32_0 = arith.constant 0 : i32
    return %arg0, %arg2, %c0_i32 : i32, i32, i32
  }
  func.func @transform_5(%arg0: i32, %arg1: i32, %arg2: i32) -> (i32, i32, i32) {
    %c0_i32 = arith.constant 0 : i32
    %c0_i32_0 = arith.constant 0 : i32
    return %arg0, %c0_i32, %arg2 : i32, i32, i32
  }
  func.func @transform_6(%arg0: i32, %arg1: i32, %arg2: i32) -> (i32, i32, i32) {
    %c0_i32 = arith.constant 0 : i32
    %c0_i32_0 = arith.constant 0 : i32
    return %arg0, %c0_i32, %arg1 : i32, i32, i32
  }
  func.func @transform_7(%arg0: i32, %arg1: i32, %arg2: i32) -> (i32, i32, i32) {
    %c0_i32 = arith.constant 0 : i32
    %c0_i32_0 = arith.constant 0 : i32
    return %arg0, %c0_i32, %arg1 : i32, i32, i32
  }
}

</mosaic_0001>

<bundles_post_ra>
// kernel: tpu_custom_call.1
= control target key start
LH: loop header
LB: loop body
LE: loop exit
PB: predicated region body
PF: predicated region fallthrough
CT: control target
= control target key end

     0   :  { %s4366_s0 = inlined_call_operand.hbm [shape: f32[1,1024], index: 0, kind: input, shape index: {}]   ;;  %s4367_s1 = inlined_call_operand.hbm [shape: f32[1,1024], index: 1, kind: input, shape index: {}]   ;;  %s4368_s2 = inlined_call_operand.hbm [shape: f32[2,8,6], index: 2, kind: input, shape index: {}]   ;;  %s4369_s3 = inlined_call_operand.hbm [shape: f32[2,8,3], index: 3, kind: input, shape index: {}]   ;;  %s4370_s4 = inlined_call_operand.hbm [shape: f32[2,8,1], index: 4, kind: input, shape index: {}]   ;;  %s4371_s5 = inlined_call_operand.hbm [shape: f32[2,24,8], index: 5, kind: input, shape index: {}]   ;;  %s4372_s6 = inlined_call_operand.hbm [shape: f32[2,8,1024], index: 6, kind: output, shape index: {0}]   ;;  %s4373_s7 = inlined_call_operand.hbm [shape: f32[2,1,1024], index: 7, kind: output, shape index: {1}]  }
   0x1   :  { %4413 = sst [smem:[#allocation41_spill]] %s4366_s0 }
   0x2   :  { %4414 = sst [smem:[#allocation42_spill]] %s4368_s2 }
   0x3   :  { %4415 = sst [smem:[#allocation43_spill]] %s4372_s6 }
   0x4   :  { %4416 = sst [smem:[#allocation44_spill]] %s4373_s7 }
   0x5   :  { %13 = vsyncpa [#allocation5], 0 }
   0x6   :  { %14 = vsyncpa [#allocation8], 0 }
   0x7   :  { %15 = vsyncpa [#allocation6], 0 }
   0x8   :  { %17 = vsyncpa [#allocation6 + $0x1], 0 }
   0x9   :  { %18 = vsyncpa [#allocation15], 0 }
   0xa   :  { %20 = vsyncpa [#allocation15 + $0x1], 0  ;;  %s3240_s24 = smov 0   ;;  %s3242_s25 = smov 0  }
   0xb   :  { %s3244_s26 = smov 0   ;;  %s3246_s27 = smov 0  }
   0xc   :  { %s3248_s28 = smov 0   ;;  %s3250_s29 = smov 0  }
   0xd LB: > { %4417 = sst [smem:[#allocation21_spill]] %s3153_s24  ;;  %s3271_s30 = sadd.s32 4294967295, %s3173_s29   ;;  %s3173_s29 = sphi %s3250_s29, %s26_s29   ;;  %s3169_s28 = sphi %s3248_s28, %s4539_s28   ;;  %s3165_s27 = sphi %s3246_s27, %s4538_s27   ;;  %s3161_s26 = sphi %s3244_s26, %s4534_s26   ;;  %s3157_s25 = sphi %s3242_s25, %s4537_s25   ;;  %s3153_s24 = sphi %s3240_s24, %s4536_s24  }
   0xe   : > { %4418 = sst [smem:[#allocation22_spill]] %s3161_s26  ;;  %s2625_s8 = sadd.s32 4294967294, %s3173_s29  }
   0xf   : > { %4419 = sst [smem:[#allocation23_spill]] %s3173_s29  ;;  %p113_p0 = scmp.ne.s32.totalorder %s3161_s26, %s3157_s25 }
  0x10   : > { %p119_p1 = scmp.ne.s32.totalorder %s3157_s25, %s3153_s24  ;;  %p4374_p2 = scmp.eq.s32.totalorder %s3271_s30, 0 }
  0x11   : > { %p229_p3 = scmp.eq.s32.totalorder %s3271_s30, 1  ;;  %p235_p4 = scmp.eq.s32.totalorder %s2625_s8, 1 }
  0x12   : > { %p3283_p5 = por %p4374_p2, %p119_p1  ;;  %p2626_p6 = scmp.ge.s32.totalorder %s3173_s29, 1 }
  0x13   : > { %p3291_p7 = por %p229_p3, %p113_p0  ;;  %p3295_p8 = por %p235_p4, %p119_p1 }
  0x14   : > { %s4420_s10 = scalar_select %p3283_p5, 1, 0 }
  0x15   : > { %s4421_s11 = scalar_select %p3291_p7, 1, 0 }
  0x16   : > { %s4422_s12 = scalar_select %p3295_p8, 1, 0 }
  0x17   : > { %p270_p9 = scmp.lt.s32.totalorder %s3173_s29, 3  ;;  %s3175_s14 = smov [#allocation4]  }
  0x18   : > { %4423 = sst [smem:[#allocation24_spill]] %s4422_s12  ;;  %s286_s15 = sshll.u32 %s3175_s14, 4  ;;  %s287_s15 = int_to_ptr.vmem [resolvable:$true] %s286_s15 }
  0x19   : > { %p3301_p11 = pnand %p2626_p6, %p270_p9  ;;  %s45_s16 = sadd.s32 1, %s3169_s28 }
  0x1a   : > { %p114_p13 = scmp.eq.s32.totalorder %s3173_s29, 0  ;;  %p3315_p1 = scmp.ge.s32.totalorder %s45_s16, 2 }
  0x1b   : > { %s4424_s13 = scalar_select %p3301_p11, 1, 0 }
  0x1c   : > { %p2714_p12 = pneg %p3301_p11  ;;  %p3322_p4 = por %p114_p13, %p113_p0 }
  0x1d   : > { %s4426_s18 = scalar_select %p3315_p1, 1, 0 }
  0x1e   : > { %p3311_p3 = pnand %p2714_p12, %p4374_p2  ;;  %s4428_s0 = sld [smem:[#allocation41_spill]] }
  0x1f   : > { %s4427_s19 = scalar_select %p3322_p4, 1, 0 }
  0x20   : > { %s4425_s17 = scalar_select %p3311_p3, 1, 0 }
  0x21   : > { %p4383_p12 = pneg %p3311_p3 }
  0x24   : > { %s2875_s23 = scalar_lea.hbm %s4428_s0, 128 }
  0x25   : > { %p2876_p9 = scmp.ne.s32.totalorder %s4428_s0, %s2875_s23  ;;  %p2882_p0 = scmp.lt.u32.totalorder %s2875_s23, %s4428_s0 }
  0x27   : > { %p2878_p10 = pnand %p4383_p12, %p2876_p9 }
  0x29   : > { %p2879_p2 = pneg %p2878_p10 }
  0x2b   : > { %p2884_p13 = pnand %p2882_p0, %p2879_p2 }
  0x2d   : > { %2887 = shalt.err (!%p2884_p13)
}
  0x2e   : > { %s2888_s20 = scalar_lea.vmem %s287_s15, 128  ;;  %p2896_p5 = scmp.lt.s32.totalorder %s287_s15, %s287_s15 }
  0x2f   : > { %p2889_p6 = scmp.ne.s32.totalorder %s287_s15, %s2888_s20  ;;  %p2897_p11 = scmp.lt.s32.totalorder %s2888_s20, %s2888_s20 }
  0x31   : > { %p2891_p8 = pnand %p2889_p6, %p4383_p12  ;;  %p2898_p4 = por %p2897_p11, %p2896_p5 }
  0x33   : > { %p2892_p7 = pneg %p2891_p8 }
  0x35   : > { %p2899_p1 = pnand %p2898_p4, %p2892_p7 }
  0x37   : > { %2902 = shalt.err (!%p2899_p1)
}
  0x38   : > { %2717 = dma.hbm_to_vmem [thread:$0]  (!%p3311_p3), %s4428_s0, 128, %s287_s15, [#allocation5]  }
  0x39   : > { %p4429_p2 = scmp.ne.s32.totalorder %s4426_s18, 0  ;;  %s313_s9 = sand.u32 1, %s3161_s26  }
  0x3a   : > { %s3357_s20 = sshll.u32 %s313_s9, 3  ;;  %s3360_s23 = sshll.u32 %s3169_s28, 7 }
  0x3b   : > { %s4541_s16 = smov (%p4429_p2, %s45_s16), 0  ;;  %s315_s8 = scalar_lea.vmem [#allocation9], %s3357_s20 }
  0x3c   : > { %4430 = sst [smem:[#allocation25_spill]] %s4541_s16  ;;  %s101_s12 = ssub.s32 %s3169_s28, %s4541_s16 }
  0x3d   : > { %p104_p5 = scmp.eq.s32.totalorder %s101_s12, 0  ;;  %s323_s14 = sshll.u32 %s315_s8, 4  ;;  %s3374_s14 = int_to_ptr.vmem [resolvable:$true] %s323_s14 }
  0x3e   : > { %s4431_s21 = sadd.s32 1, %s3161_s26  ;;  %s4433_s2 = sld [smem:[#allocation42_spill]] }
  0x3f   : > { %s3366_s22 = scalar_select %p104_p5, %s3161_s26, %s4431_s21  }
  0x40   : > { %p4434_p7 = scmp.ne.s32.totalorder %s4427_s19, 0  ;;  %p4435_p8 = scmp.lt.s32.totalorder %s3173_s29, 2 }
  0x41   : > { %4432 = sst [smem:[#allocation26_spill]] %s3366_s22  ;;  %s3384_s8 = smul.u32 24, %s313_s9 }
  0x42   : > { %p3380_p10 = pnand %p4435_p8, %p4434_p7  ;;  %s3390_s15 = scalar_lea.hbm %s4369_s3, %s3360_s23 }
  0x43   : > { %s4437_s18 = sand.u32 1, %s3173_s29  }
  0x44   : > { %s3372_s0 = scalar_lea.hbm %s4433_s2, %s3360_s23  ;;  %s3394_s22 = scalar_lea.sflag [#allocation5], %s4437_s18 }
  0x45   : > { %s4436_s12 = scalar_select %p3380_p10, 1, 0 }
  0x46   : > { %s2903_s26 = scalar_lea.hbm %s3372_s0, 128  ;;  %p3400_p1 = pneg %p3380_p10 }
  0x47   : > { %p2904_p11 = scmp.ne.s32.totalorder %s3372_s0, %s2903_s26  ;;  %s2908_s16 = scalar_lea.hbm %s4433_s2, 256 }
  0x48   : > { %s4438_s19 = scalar_select %p3400_p1, 1, 0 }
  0x49   : > { %p2906_p4 = pnand %p3400_p1, %p2904_p11  ;;  %p2909_p9 = scmp.lt.u32.totalorder %s3372_s0, %s4433_s2 }
  0x4a   : > { %p2910_p0 = scmp.lt.u32.totalorder %s2908_s16, %s2903_s26  ;;  %p2912_p2 = scmp.lt.u32.totalorder %s2903_s26, %s3372_s0 }
  0x4b   : > { %p2907_p6 = pneg %p2906_p4 }
  0x4c   : > { %p2911_p13 = por %p2910_p0, %p2909_p9 }
  0x4e   : > { %p2913_p5 = por %p2912_p2, %p2911_p13 }
  0x50   : > { %p2914_p7 = pnand %p2913_p5, %p2907_p6 }
  0x52   : > { %2917 = shalt.err (!%p2914_p7)
}
  0x53   : > { %s2918_s18 = scalar_lea.vmem %s3374_s14, 128  ;;  %s3176_s24 = smov [#allocation9]  }
  0x54   : > { %p2919_p8 = scmp.ne.s32.totalorder %s3374_s14, %s2918_s18  ;;  %s2923_s9 = sshll.u32 %s3176_s24, 4  ;;  %s2924_s9 = int_to_ptr.vmem [resolvable:$false] %s2923_s9 }
  0x55   : > { %s2925_s6 = scalar_lea.vmem %s2924_s9, 256  ;;  %p2926_p12 = scmp.lt.s32.totalorder %s3374_s14, %s2924_s9 }
  0x56   : > { %p2921_p11 = pnand %p2919_p8, %p3400_p1  ;;  %p2927_p3 = scmp.lt.s32.totalorder %s2925_s6, %s2918_s18 }
  0x58   : > { %p2922_p4 = pneg %p2921_p11  ;;  %p2928_p9 = por %p2927_p3, %p2926_p12 }
  0x5a   : > { %p2929_p0 = pnand %p2928_p9, %p2922_p4 }
  0x5c   : > { %2932 = shalt.err (!%p2929_p0)
}
  0x5d   : > { %2724 = dma.hbm_to_vmem [thread:$0]  (!%p3380_p10), %s3372_s0, 128, %s3374_s14, %s3394_s22  }
  0x5e   : > { %s372_s26 = scalar_lea.vmem [#allocation12], %s3384_s8  ;;  %s334_s21 = scalar_lea.vmem [#allocation10], %s3357_s20 }
  0x5f   : > { %s380_s16 = sshll.u32 %s372_s26, 4  ;;  %s342_s18 = sshll.u32 %s334_s21, 4  ;;  %s3426_s16 = int_to_ptr.vmem [resolvable:$true] %s380_s16  ;;  %s343_s18 = int_to_ptr.vmem [resolvable:$true] %s342_s18 }
  0x60   : > { %s2933_s24 = scalar_lea.hbm %s3390_s15, 128  ;;  %s2938_s2 = scalar_lea.hbm %s4369_s3, 256 }
  0x61   : > { %p2934_p3 = scmp.ne.s32.totalorder %s3390_s15, %s2933_s24  ;;  %p2939_p13 = scmp.lt.u32.totalorder %s3390_s15, %s4369_s3 }
  0x62   : > { %p2940_p2 = scmp.lt.u32.totalorder %s2938_s2, %s2933_s24  ;;  %p2942_p7 = scmp.lt.u32.totalorder %s2933_s24, %s3390_s15 }
  0x63   : > { %p2936_p12 = pnand %p2934_p3, %p3400_p1 }
  0x64   : > { %p2941_p5 = por %p2940_p2, %p2939_p13 }
  0x65   : > { %p2937_p6 = pneg %p2936_p12 }
  0x66   : > { %p2943_p8 = por %p2942_p7, %p2941_p5 }
  0x68   : > { %p2944_p11 = pnand %p2943_p8, %p2937_p6 }
  0x6a   : > { %2947 = shalt.err (!%p2944_p11)
}
  0x6b   : > { %s2948_s0 = scalar_lea.vmem %s343_s18, 128  ;;  %s3177_s14 = smov [#allocation10]  }
  0x6c   : > { %p2949_p4 = scmp.ne.s32.totalorder %s343_s18, %s2948_s0  ;;  %s2953_s8 = sshll.u32 %s3177_s14, 4  ;;  %s2954_s8 = int_to_ptr.vmem [resolvable:$false] %s2953_s8 }
  0x6d   : > { %s2955_s26 = scalar_lea.vmem %s2954_s8, 256  ;;  %p2956_p3 = scmp.lt.s32.totalorder %s343_s18, %s2954_s8 }
  0x6e   : > { %p2951_p9 = pnand %p2949_p4, %p3400_p1  ;;  %p2957_p12 = scmp.lt.s32.totalorder %s2955_s26, %s2948_s0 }
  0x70   : > { %p2952_p0 = pneg %p2951_p9  ;;  %p2958_p10 = por %p2957_p12, %p2956_p3 }
  0x72   : > { %p2959_p2 = pnand %p2958_p10, %p2952_p0 }
  0x74   : > { %2962 = shalt.err (!%p2959_p2)
}
  0x75   : > { %p4439_p13 = scmp.ne.s32.totalorder %s4436_s12, 0  ;;  %s3450_s29 = scalar_lea.hbm %s4370_s4, %s3360_s23 }
  0x76   : > { %s353_s21 = scalar_lea.vmem [#allocation11], %s3357_s20  ;;  %s3178_s9 = smov [#allocation7]  }
  0x77   : > { %2727 = dma.hbm_to_vmem [thread:$0]  (!%p4439_p13), %s3390_s15, 128, %s343_s18, %s3394_s22  }
  0x78   : > { %s361_s24 = sshll.u32 %s353_s21, 4  ;;  %s300_s6 = sshll.u32 %s3178_s9, 4  ;;  %s3453_s24 = int_to_ptr.vmem [resolvable:$true] %s361_s24  ;;  %s301_s6 = int_to_ptr.vmem [resolvable:$true] %s300_s6 }
  0x79   : > { %s2963_s0 = scalar_lea.hbm %s3450_s29, 128  ;;  %s2968_s23 = scalar_lea.hbm %s4370_s4, 256 }
  0x7a   : > { %p2964_p10 = scmp.ne.s32.totalorder %s3450_s29, %s2963_s0  ;;  %p2969_p7 = scmp.lt.u32.totalorder %s3450_s29, %s4370_s4 }
  0x7b   : > { %p2970_p8 = scmp.lt.u32.totalorder %s2968_s23, %s2963_s0  ;;  %p2972_p4 = scmp.lt.u32.totalorder %s2963_s0, %s3450_s29 }
  0x7c   : > { %p2966_p6 = pnand %p2964_p10, %p3400_p1 }
  0x7d   : > { %p2971_p11 = por %p2970_p8, %p2969_p7 }
  0x7e   : > { %p2967_p5 = pneg %p2966_p6 }
  0x7f   : > { %p2973_p9 = por %p2972_p4, %p2971_p11 }
  0x81   : > { %p2974_p0 = pnand %p2973_p9, %p2967_p5 }
  0x83   : > { %2977 = shalt.err (!%p2974_p0)
}
  0x84   : > { %s2978_s20 = scalar_lea.vmem %s3453_s24, 128  ;;  %s3179_s26 = smov [#allocation11]  }
  0x85   : > { %p2979_p3 = scmp.ne.s32.totalorder %s3453_s24, %s2978_s20  ;;  %s2983_s2 = sshll.u32 %s3179_s26, 4  ;;  %s2984_s2 = int_to_ptr.vmem [resolvable:$false] %s2983_s2 }
  0x86   : > { %s2985_s7 = scalar_lea.vmem %s2984_s2, 256  ;;  %p2986_p10 = scmp.lt.s32.totalorder %s3453_s24, %s2984_s2 }
  0x87   : > { %p2981_p12 = pnand %p2979_p3, %p3400_p1  ;;  %p2987_p6 = scmp.lt.s32.totalorder %s2985_s7, %s2978_s20 }
  0x89   : > { %p2982_p2 = pneg %p2981_p12  ;;  %p2988_p7 = por %p2987_p6, %p2986_p10 }
  0x8b   : > { %p2989_p8 = pnand %p2988_p7, %p2982_p2 }
  0x8d   : > { %2992 = shalt.err (!%p2989_p8)
}
  0x8e   : > { %2730 = dma.hbm_to_vmem [thread:$0]  (!%p4439_p13), %s3450_s29, 128, %s3453_s24, %s3394_s22  }
  0x8f   : > { %s2692_s21 = smul.u32 384, %s3169_s28  ;;  %s2993_s15 = scalar_lea.hbm %s4367_s1, 128 }
  0x90   : > { %p2994_p5 = scmp.ne.s32.totalorder %s4367_s1, %s2993_s15  ;;  %p4440_p11 = scmp.ne.s32.totalorder %s4425_s17, 0 }
  0x91   : > { %p3000_p3 = scmp.lt.u32.totalorder %s2993_s15, %s4367_s1 }
  0x92   : > { %p4441_p4 = pneg %p4440_p11 }
  0x94   : > { %p2996_p9 = pnand %p2994_p5, %p4441_p4 }
  0x96   : > { %p2997_p0 = pneg %p2996_p9 }
  0x98   : > { %p3002_p12 = pnand %p3000_p3, %p2997_p0 }
  0x9a   : > { %3005 = shalt.err (!%p3002_p12)
}
  0x9b   : > { %s3006_s29 = scalar_lea.vmem %s301_s6, 128  ;;  %p4442_p10 = pmov %p4441_p4 }
  0x9c   : > { %p3007_p2 = scmp.ne.s32.totalorder %s301_s6, %s3006_s29  ;;  %p3014_p8 = scmp.lt.s32.totalorder %s301_s6, %s301_s6 }
  0x9d   : > { %p3015_p13 = scmp.lt.s32.totalorder %s3006_s29, %s3006_s29 }
  0x9e   : > { %p3009_p6 = pnand %p3007_p2, %p4442_p10 }
  0x9f   : > { %p3016_p1 = por %p3015_p13, %p3014_p8 }
  0xa0   : > { %p3010_p7 = pneg %p3009_p6 }
  0xa2   : > { %p3017_p4 = pnand %p3016_p1, %p3010_p7 }
  0xa4   : > { %3020 = shalt.err (!%p3017_p4)
}
  0xa5   : > { %2720 = dma.hbm_to_vmem [thread:$0]  (!%p4440_p11), %s4367_s1, 128, %s301_s6, [#allocation8]  }
  0xa6   : > { %s3501_s7 = scalar_lea.hbm %s4371_s5, %s2692_s21  ;;  %p4443_p1 = scmp.ne.s32.totalorder %s4438_s19, 0 }
  0xa7   : > { %s3021_s9 = scalar_lea.hbm %s3501_s7, 384  ;;  %s3026_s15 = scalar_lea.hbm %s4371_s5, 768 }
  0xa8   : > { %p3022_p13 = scmp.ne.s32.totalorder %s3501_s7, %s3021_s9  ;;  %p3027_p11 = scmp.lt.u32.totalorder %s3501_s7, %s4371_s5 }
  0xa9   : > { %p3028_p0 = scmp.lt.u32.totalorder %s3026_s15, %s3021_s9  ;;  %p3030_p12 = scmp.lt.u32.totalorder %s3021_s9, %s3501_s7 }
  0xaa   : > { %p3024_p5 = pnand %p3022_p13, %p4443_p1 }
  0xab   : > { %p3029_p3 = por %p3028_p0, %p3027_p11 }
  0xac   : > { %p3025_p9 = pneg %p3024_p5 }
  0xad   : > { %p3031_p2 = por %p3030_p12, %p3029_p3 }
  0xaf   : > { %p3032_p10 = pnand %p3031_p2, %p3025_p9 }
  0xb1   : > { %3035 = shalt.err (!%p3032_p10)
}
  0xb2   : > { %s3036_s21 = scalar_lea.vmem %s3426_s16, 384  ;;  %s3180_s23 = smov [#allocation12]  }
  0xb3   : > { %p3037_p6 = scmp.ne.s32.totalorder %s3426_s16, %s3036_s21  ;;  %s3041_s14 = sshll.u32 %s3180_s23, 4  ;;  %s3042_s14 = int_to_ptr.vmem [resolvable:$false] %s3041_s14 }
  0xb4   : > { %s3043_s8 = scalar_lea.vmem %s3042_s14, 768  ;;  %p3044_p4 = scmp.lt.s32.totalorder %s3426_s16, %s3042_s14 }
  0xb5   : > { %p3039_p7 = pnand %p3037_p6, %p4443_p1  ;;  %p3045_p13 = scmp.lt.s32.totalorder %s3043_s8, %s3036_s21 }
  0xb7   : > { %p3040_p8 = pneg %p3039_p7  ;;  %p3046_p5 = por %p3045_p13, %p3044_p4 }
  0xb9   : > { %p3047_p11 = pnand %p3046_p5, %p3040_p8 }
  0xbb   : > { %3050 = shalt.err (!%p3047_p11)
}
  0xbc   : > { %s3181_s29 = smov 128   ;;  %s3182_s24 = smov 8  }
  0xbd   : > { %p4444_p9 = scmp.ne.s32.totalorder %s4436_s12, 0  ;;  %p4445_p1 = scmp.ne.s32.totalorder %s4424_s13, 0 }
  0xbf   : > { %2733 = dma.hbm_to_vmem [thread:$0]  (!%p4444_p9), %s3501_s7, 384, %s3426_s16, %s3394_s22, %s3181_s29, %s3181_s29, %s3182_s24  }
  0xc0   : > { %392 = sbr.rel (%p4445_p1) target bundleno = 1049 (0x419), region = 44 }
  0xc7   : > { %p4446_p0 = scmp.eq.s32.totalorder %s3271_s30, 0 }
  0xc9   : > { %3132 = dma.done.wait (%p4446_p0), [#allocation5], 128   ;;  %p4447_p3 = pmov %p4446_p0 }
  0xca   : > { %p4448_p12 = pmov %p4446_p0 }
  0xcb   : > { %3134 = vsyncadd (%p4447_p3), [#allocation5], 4294967168 }
  0xcc   : > { %3136 = dma.done.wait (%p4448_p12), [#allocation8], 128   ;;  %p4449_p2 = pmov %p4446_p0 }
  0xcd   : > { %s402_s12 = sand.u32 1, %s3271_s30   ;;  %s3537_s22 = sand.u32 1, %s3157_s25  }
  0xce   : > { %3138 = vsyncadd (%p4449_p2), [#allocation8], 4294967168  ;;  %s3540_s13 = sshll.u32 %s3537_s22, 3  ;;  %s403_s19 = scalar_lea.sflag [#allocation5], %s402_s12 }
  0xcf   : > { %s406_s16 = scalar_lea.vmem [#allocation9], %s3540_s13  ;;  %p4450_p10 = scmp.ne.s32.totalorder %s4420_s10, 0 }
  0xd1   : > { %3140 = dma.done.wait (%p4450_p10), %s403_s19, 768  }
  0xd2   : > { %3142 = vsyncadd (%p4450_p10), %s403_s19, 4294966528  ;;  %v4394_v0 = vmov 0   ;;  %v511_v1 = vld [vmem:[%s406_s16] sm:$0xff]  ;;  %s3184_s20 = smov 2   ;;  %s3185_s30 = smov 4   ;;  %v3186_v2 = vmov 1   ;;  %v549_v26 = vlaneseq }
  0xd3   : > { %2814 = vset.pattern.permute.xlu1 %v4394_v0  ;;  %518 = vrot.lane.b32.xlu0 %v511_v1, %s3184_s20  ;;  %s3187_s26 = smov 1   ;;  %s3188_s2 = smov 125   ;;  %v3189_v7 = vmov 5   ;;  %v3190_v8 = vmov 4   ;;  %v3191_v9 = vmov 3   ;;  %v3192_v10 = vmov 2  }
  0xd4   : > { %2815 = vset.pattern.permute.xlu0 %v3186_v2  ;;  %s3193_s10 = smov 126   ;;  %s424_s7 = scalar_lea.vmem [#allocation11], %s3540_s13  ;;  %v3194_v21 = vmov -1e-10   ;;  %v4396_v25 = vmov 0.0   ;;  %v3554_v28 = vshrl.u32 %v549_v26, 7 }
  0xd5   : > { %v513_v13 = vld [vmem:[%s424_s7] sm:$0xff]  ;;  %s415_s9 = scalar_lea.vmem [#allocation10], %s3540_s13  ;;  %1109 = vmatprep.mubr.f32.mxu0 %v4396_v25  ;;  %1180 = vmatprep.mubr.f32.mxu1 %v4396_v25  ;;  %v509_v35 = vld [vmem:[#allocation4] sm:$0xff]  ;;  %v510_v39 = vld [vmem:[#allocation7] sm:$0xff]  ;;  %s2693_s17 = smul.u32 24, %s3537_s22 }
  0xd6   : > { %v512_v14 = vld [vmem:[%s415_s9] sm:$0xff]  ;;  %vm755_vm0 = vcmp.gt.f32.partialorder %v513_v13, 0.0  ;;  %4451 = vst [vmem:[#allocation27_spill] sm:$0xff] %v3554_v28  ;;  %v3557_v30 = vsub.s32 4, %v3554_v28  ;;  %v3560_v31 = vsub.s32 0, %v3554_v28  ;;  %v3563_v32 = vsub.s32 5, %v3554_v28 }
  0xd7   : > { %522 = vrot.lane.b32.xlu0 %v511_v1, %s3185_s30  ;;  %v796_v15 = vsel %vm755_vm0, 1, %v4394_v0  ;;  %v3566_v33 = vsub.s32 6, %v3554_v28  ;;  %v3569_v34 = vsub.s32 7, %v3554_v28  ;;  %v3572_v36 = vsub.s32 2, %v3554_v28  ;;  %s3974_s0 = scalar_lea.vmem [#allocation12], %s2693_s17  ;;  %s483_s15 = scalar_lea.vmem [#allocation14], %s3540_s13 }
  0xd8   : > { %4452 = vst [vmem:[#allocation28_spill] sm:$0xff] %v3557_v30  ;;  %4453 = vst [vmem:[#allocation29_spill] sm:$0xff] %v3560_v31  ;;  %v3575_v37 = vsub.s32 1, %v3554_v28  ;;  %v3578_v38 = vsub.s32 3, %v3554_v28  ;;  %v3581_v40 = vcvt.s32.f32 %v3554_v28  ;;  %v568_v41 = vrot.slane %v509_v35, %v3557_v30  ;;  %s2674_s18 = sshll.u32 %s3165_s27, 7  ;;  %s2417_s6 = sshll.u32 %s483_s15, 4  ;;  %s2418_s6 = int_to_ptr.vmem [resolvable:$true] %s2417_s6 }
  0xd9   : > { %4454 = vst [vmem:[#allocation30_spill] sm:$0xff] %v3563_v32  ;;  %4455 = vst [vmem:[#allocation31_spill] sm:$0xff] %v3566_v33  ;;  %v552_v42 = vrot.slane %v509_v35, %v3560_v31  ;;  %v572_v43 = vrot.slane %v509_v35, %v3563_v32  ;;  %v576_v44 = vrot.slane %v509_v35, %v3566_v33  ;;  %s4510_s14 = sld [smem:[#allocation44_spill]]  ;;  %s2385_s29 = scalar_lea.sflag [#allocation15], %s3537_s22 }
  0xda   : > { %4456 = vst [vmem:[#allocation32_spill] sm:$0xff] %v3569_v34  ;;  %4457 = vst [vmem:[#allocation33_spill] sm:$0xff] %v3572_v36  ;;  %v580_v45 = vrot.slane %v509_v35, %v3569_v34  ;;  %v560_v47 = vrot.slane %v509_v35, %v3572_v36  ;;  %v605_v49 = vrot.slane %v510_v39, %v3560_v31  ;;  %s3051_s24 = scalar_lea.vmem %s2418_s6, 128  ;;  %p4511_p7 = scmp.ne.s32.totalorder %s4421_s11, 0 }
  0xdb   : > { %4458 = vst [vmem:[#allocation34_spill] sm:$0xff] %v3575_v37  ;;  %4459 = vst [vmem:[#allocation35_spill] sm:$0xff] %v3578_v38  ;;  %v556_v50 = vrot.slane %v509_v35, %v3575_v37  ;;  %v564_v51 = vrot.slane %v509_v35, %v3578_v38  ;;  %v613_v52 = vrot.slane %v510_v39, %v3572_v36  ;;  %p3052_p6 = scmp.ne.s32.totalorder %s2418_s6, %s3051_s24  ;;  %s3197_s12 = smov [#allocation14]  }
  0xdc   : > { %v621_v53 = vrot.slane %v510_v39, %v3557_v30  ;;  %v625_v54 = vrot.slane %v510_v39, %v3563_v32  ;;  %v609_v55 = vrot.slane %v510_v39, %v3575_v37  ;;  %v629_v57 = vrot.slane %v510_v39, %v3566_v33  ;;  %s3055_s19 = sshll.u32 %s3197_s12, 4  ;;  %s3056_s19 = int_to_ptr.vmem [resolvable:$false] %s3055_s19 }
  0xdd   : > { %v633_v58 = vrot.slane %v510_v39, %v3569_v34  ;;  %v617_v59 = vrot.slane %v510_v39, %v3578_v38  ;;  %p3053_p8 = pnand %p3052_p6, %p4511_p7  ;;  %s3057_s16 = scalar_lea.vmem %s3056_s19, 256 }
  0xde   : > { %p3058_p13 = scmp.lt.s32.totalorder %s2418_s6, %s3056_s19  ;;  %p3059_p5 = scmp.lt.s32.totalorder %s3057_s16, %s3051_s24 }
  0xdf   : > { %s4249_s8 = scalar_lea.hbm %s4510_s14, %s2674_s18  ;;  %p3054_p4 = pneg %p3053_p8 }
  0xe0   : > { %p3060_p11 = por %p3059_p5, %p3058_p13 }
  0xe2   : > { %p3061_p9 = pnand %p3060_p11, %p3054_p4 }
 0x145   : > { %v519_v3 = vpop.permute.xlu0 %518 }
 0x146   : > { %v521_v4 = vsub.f32 %v511_v1, %v519_v3 }
 0x148   : > { %532 = vrot.lane.b32.xlu1 %v521_v4, %s3187_s26 }
 0x149   : > { %v523_v5 = vpop.permute.xlu0 %522 }
 0x14a   : > { %v525_v6 = vsub.f32 %v511_v1, %v523_v5 }
 0x14c   : > { %527 = vrot.lane.b32.xlu1 %v525_v6, %s3188_s2 }
 0x150   : > { %590 = vperm.xlu1 %2814, %v511_v1  }
 0x154   : > { %2816 = vset.pattern.permute.xlu1 %v3189_v7 }
 0x155   : > { %655 = vperm.xlu1 %2816, %v525_v6  }
 0x159   : > { %2817 = vset.pattern.permute.xlu1 %v3190_v8 }
 0x15a   : > { %667 = vperm.xlu1 %2817, %v525_v6  }
 0x15e   : > { %2819 = vset.pattern.permute.xlu1 %v3191_v9 }
 0x15f   : > { %712 = vperm.xlu1 %2819, %v521_v4  }
 0x163   : > { %2821 = vset.pattern.permute.xlu1 %v3192_v10 }
 0x1ba   : > { %v533_v11 = vpop.permute.xlu1 %532 }
 0x1bb   : > { %v535_v12 = vmul.f32 %v533_v11, %v525_v6 }
 0x1bd   : > { %537 = vrot.lane.b32.xlu0 %v535_v12, %s3193_s10 }
 0x1be   : > { %v528_v16 = vpop.permute.xlu1 %527 }
 0x1bf   : > { %v530_v17 = vmul.f32 %v528_v16, %v521_v4 }
 0x1c1   : > { %643 = vperm.xlu0 %2815, %v511_v1  }
 0x1c5   : > { %2818 = vset.pattern.permute.xlu0 %v3192_v10 }
 0x1c6   : > { %700 = vperm.xlu0 %2818, %v521_v4  }
 0x1ca   : > { %2820 = vset.pattern.permute.xlu0 %v4394_v0 }
 0x1cb   : > { %811 = vperm.xlu0 %2820, %v512_v14  }
 0x1cf   : > { %798 = vperm.xlu0 %2820, %v796_v15   ;;  %v591_v27 = vpop.permute.xlu1 %590 }
 0x1d0   : > { %v597_v56 = vsub.f32 %v568_v41, %v591_v27  ;;  %v593_v60 = vsub.f32 %v552_v42, %v591_v27  ;;  %v598_v61 = vsub.f32 %v572_v43, %v591_v27  ;;  %v599_v62 = vsub.f32 %v576_v44, %v591_v27 }
 0x1d1   : > { %v600_v63 = vsub.f32 %v580_v45, %v591_v27  ;;  %v595_v1 = vsub.f32 %v560_v47, %v591_v27  ;;  %v594_v3 = vsub.f32 %v556_v50, %v591_v27  ;;  %v596_v4 = vsub.f32 %v564_v51, %v591_v27 }
 0x1d3   : > { %2824 = vset.pattern.permute.xlu0 %v3192_v10 }
 0x1d4   : > { %v656_v29 = vpop.permute.xlu1 %655 }
 0x1d5   : > { %v3603_v5 = vmul.f32 %v656_v29, %v598_v61  ;;  %v3605_v6 = vmul.f32 %v656_v29, %v599_v62  ;;  %v3607_v7 = vmul.f32 %v656_v29, %v600_v63  ;;  %v659_v13 = vmul.f32 %v656_v29, %v594_v3 }
 0x1d9   : > { %v3588_v46 = vpop.permute.xlu1 %667 }
 0x1de   : > { %v713_v8 = vpop.permute.xlu1 %712 }
 0x1df   : > { %v3628_v44 = vmul.f32 %v713_v8, %v599_v62  ;;  %v716_v45 = vmul.f32 %v713_v8, %v594_v3  ;;  %v718_v51 = vmul.f32 %v713_v8, %v596_v4 }
 0x22f   : > { %v538_v18 = vpop.permute.xlu0 %537 }
 0x230   : > { %v540_v19 = vsub.f32 %v530_v17, %v538_v18  ;;  %v661_v17 = vmul.f32 %v656_v29, %v596_v4  ;;  %v658_v18 = vmul.f32 %v656_v29, %v593_v60 }
 0x232   : > { %v541_v20 = vand.u32 2147483647, %v540_v19  ;;  %vm543_vm1 = vcmp.ge.f32.partialorder %v540_v19, 0.0 }
 0x233   : > { %v544_v22 = vsel %vm543_vm1, 1e-10, %v3194_v21  ;;  %v3613_v21 = vmul.f32 %v713_v8, %v597_v56 }
 0x234   : > { %vm542_vm2 = vcmp.lt.f32.partialorder %v541_v20, 1e-10  ;;  %v3611_v20 = vmul.f32 %v713_v8, %v595_v1 }
 0x235   : > { %v545_v23 = vsel %vm542_vm2, %v544_v22, %v540_v19  ;;  %v715_v19 = vmul.f32 %v713_v8, %v593_v60  ;;  %v660_v22 = vmul.f32 %v656_v29, %v595_v1 }
 0x236   : > { %2825 = vrcp.f32 %v545_v23  ;;  %v3615_v23 = vmul.f32 %v713_v8, %v598_v61 }
 0x240   : > { %v2826_v24 = vpop.eup %2825  ;;  %v644_v48 = vpop.permute.xlu0 %643 }
 0x241   : > { %688 = vperm.xlu1 %2821, %v2826_v24   ;;  %v647_v9 = vsub.f32 %v609_v55, %v644_v48  ;;  %v648_v11 = vsub.f32 %v613_v52, %v644_v48  ;;  %v650_v15 = vsub.f32 %v621_v53, %v644_v48  ;;  %v651_v16 = vsub.f32 %v625_v54, %v644_v48 }
 0x242   : > { %v3617_v24 = vsub.f32 %v629_v57, %v644_v48  ;;  %v3621_v35 = vsub.f32 %v633_v58, %v644_v48 }
 0x243   : > { %v671_v26 = vmul.f32 %v3588_v46, %v647_v9  ;;  %v672_v43 = vmul.f32 %v3588_v46, %v648_v11  ;;  %v3634_v47 = vmul.f32 %v3588_v46, %v651_v16 }
 0x244   : > { %v3642_v52 = vmul.f32 %v3588_v46, %v3617_v24  ;;  %v3649_v60 = vmul.f32 %v3588_v46, %v3621_v35 }
 0x245   : > { %2822 = vset.pattern.permute.xlu1 %v3186_v2  ;;  %v3601_v2 = vmul.f32 %v656_v29, %v597_v56  ;;  %v3609_v12 = vpop.permute.xlu0 %700  ;;  %v3631_v29 = vmul.f32 %v3588_v46, %v650_v15  ;;  %v679_v54 = vsub.f32 %v659_v13, %v671_v26 }
 0x246   : > { %823 = vperm.xlu1 %2822, %v512_v14   ;;  %v704_v27 = vmul.f32 %v3609_v12, %v647_v9  ;;  %v705_v53 = vmul.f32 %v3609_v12, %v648_v11  ;;  %v3673_v11 = vmul.f32 %v3609_v12, %v651_v16 }
 0x248   : > { %v724_v55 = vsub.f32 %v704_v27, %v716_v45 }
 0x24a   : > { %2823 = vset.pattern.permute.xlu1 %v3192_v10  ;;  %v646_v10 = vsub.f32 %v605_v49, %v644_v48  ;;  %v3623_v39 = vpop.permute.xlu0 %811  ;;  %v3636_v49 = vmul.f32 %v713_v8, %v600_v63 }
 0x24b   : > { %843 = vperm.xlu1 %2823, %v512_v14   ;;  %v649_v14 = vsub.f32 %v617_v59, %v644_v48  ;;  %v680_v59 = vsub.f32 %v660_v22, %v672_v43 }
 0x24c   : > { %v670_v42 = vmul.f32 %v3588_v46, %v646_v10  ;;  %v703_v48 = vmul.f32 %v3609_v12, %v646_v10  ;;  %v3670_v10 = vmul.f32 %v3609_v12, %v650_v15 }
 0x24d   : > { %v673_v41 = vmul.f32 %v3588_v46, %v649_v14  ;;  %v706_v50 = vmul.f32 %v3609_v12, %v649_v14  ;;  %v725_v14 = vsub.f32 %v705_v53, %v3611_v20 }
 0x24e   : > { %v678_v58 = vsub.f32 %v658_v18, %v670_v42  ;;  %v3661_v3 = vpop.permute.xlu0 %798  ;;  %v723_v9 = vsub.f32 %v703_v48, %v715_v19 }
 0x24f   : > { %v681_v57 = vsub.f32 %v661_v17, %v673_v41  ;;  %v726_v8 = vsub.f32 %v706_v50, %v718_v51  ;;  %vm800_vm3 = vcmp.eq.s32.totalorder %v3661_v3, 1 }
 0x2c0   : > { %v3645_v56 = vpop.permute.xlu1 %688 }
 0x2c1   : > { %v3652_v61 = vmul.f32 %v3645_v56, %v679_v54  ;;  %v3655_v62 = vmul.f32 %v724_v55, %v3645_v56  ;;  %v3664_v4 = vmul.f32 %v3645_v56, %v681_v57  ;;  %v3667_v46 = vmul.f32 %v3645_v56, %v678_v58 }
 0x2c2   : > { %v3678_v17 = vmul.f32 %v726_v8, %v3645_v56  ;;  %v3682_v22 = vmul.f32 %v723_v9, %v3645_v56  ;;  %v3702_v41 = vmul.f32 %v3645_v56, %v680_v59 }
 0x2c3   : > { %v740_v13 = vsub.f32 1.0, %v3652_v61  ;;  %v742_v18 = vsub.f32 1.0, %v3664_v4  ;;  %v739_v19 = vsub.f32 1.0, %v3667_v46  ;;  %vm765_vm4 = vcmp.ge.f32.partialorder %v3652_v61, 0.0 }
 0x2c4   : > { %vm781_vm5 = vcmp.ge.f32.partialorder %v3655_v62, 0.0  ;;  %vm767_vm10 = vcmp.ge.f32.partialorder %v3664_v4, 0.0  ;;  %vm783_vm12 = vcmp.ge.f32.partialorder %v3678_v17, 0.0  ;;  %vm764_vm13 = vcmp.ge.f32.partialorder %v3667_v46, 0.0 }
 0x2c5   : > { %v3685_v26 = vpop.permute.xlu1 %823  ;;  %v3689_v15 = vsub.f32 %v740_v13, %v3655_v62  ;;  %v3696_v20 = vsub.f32 %v742_v18, %v3678_v17  ;;  %v3699_v27 = vsub.f32 %v739_v19, %v3682_v22  ;;  %v741_v8 = vsub.f32 1.0, %v3702_v41 }
 0x2c6   : > { %v827_v16 = vmul.f32 %v3685_v26, %v3652_v61  ;;  %v829_v45 = vmul.f32 %v3685_v26, %v3664_v4  ;;  %v826_v51 = vmul.f32 %v3685_v26, %v3667_v46  ;;  %v3742_v18 = vmul.f32 %v725_v14, %v3645_v56 }
 0x2c7   : > { %vm757_vm6 = vcmp.ge.f32.partialorder %v3689_v15, 0.0  ;;  %v815_v42 = vmul.f32 %v3623_v39, %v3689_v15  ;;  %v2102_v43 = vmin.f32 %v3689_v15, %v3652_v61  ;;  %vm759_vm8 = vcmp.ge.f32.partialorder %v3696_v20, 0.0 }
 0x2c8   : > { %vm773_vm7 = vmand %vm757_vm6, %vm765_vm4  ;;  %v817_v48 = vmul.f32 %v3623_v39, %v3696_v20  ;;  %v2104_v50 = vmin.f32 %v3696_v20, %v3664_v4  ;;  %v814_v54 = vmul.f32 %v3623_v39, %v3699_v27  ;;  %v2101_v55 = vmin.f32 %v3699_v27, %v3667_v46 }
 0x2c9   : > { %vm789_vm9 = vmand %vm773_vm7, %vm781_vm5  ;;  %v2110_v53 = vmin.f32 %v2102_v43, %v3655_v62  ;;  %v835_v9 = vadd.f32 %v827_v16, %v815_v42  ;;  %vm756_vm15 = vcmp.ge.f32.partialorder %v3699_v27, 0.0  ;;  %v3756_v25 = vsub.f32 %v741_v8, %v3742_v18 }
 0x2ca   : > { %v3724_v57 = vpop.permute.xlu1 %843  ;;  %vm3728_vm11 = vmand %vm789_vm9, %vm800_vm3  ;;  %v2112_v59 = vmin.f32 %v2104_v50, %v3678_v17  ;;  %v837_v19 = vadd.f32 %v829_v45, %v817_v48  ;;  %v834_v50 = vadd.f32 %v826_v51, %v814_v54  ;;  %v2109_v14 = vmin.f32 %v2101_v55, %v3682_v22 }
 0x2cb   : > { %v847_v13 = vmul.f32 %v3724_v57, %v3655_v62  ;;  %vm775_vm14 = vmand %vm759_vm8, %vm767_vm10  ;;  %v849_v43 = vmul.f32 %v3724_v57, %v3678_v17  ;;  %v846_v16 = vmul.f32 %v3724_v57, %v3682_v22  ;;  %v2118_v0 = vsub.f32 0.0, %v2110_v53 }
 0x2cc   : > { %vm791_vm0 = vmand %vm775_vm14, %vm783_vm12  ;;  %v709_v45 = vmul.f32 %v3609_v12, %v3617_v24  ;;  %vm780_vm4 = vcmp.ge.f32.partialorder %v3682_v22, 0.0  ;;  %v3765_v53 = vmul.f32 %v3609_v12, %v3621_v35  ;;  %v2120_v55 = vsub.f32 0.0, %v2112_v59 }
 0x2cd   : > { %v855_v42 = vadd.f32 %v847_v13, %v835_v9  ;;  %vm3750_vm1 = vmand %vm791_vm0, %vm800_vm3  ;;  %v857_v48 = vadd.f32 %v849_v43, %v837_v19  ;;  %v854_v51 = vadd.f32 %v846_v16, %v834_v50  ;;  %vm758_vm6 = vcmp.ge.f32.partialorder %v3756_v25, 0.0 }
 0x2ce   : > { %vm772_vm2 = vmand %vm756_vm15, %vm764_vm13  ;;  %vm766_vm8 = vcmp.ge.f32.partialorder %v3702_v41, 0.0  ;;  %v816_v12 = vmul.f32 %v3623_v39, %v3756_v25  ;;  %v727_v35 = vsub.f32 %v3670_v10, %v3613_v21  ;;  %v2126_v59 = vmax.f32 %v2118_v0, 0.0 }
 0x2cf   : > { %v863_v54 = vsel %vm3728_vm11, %v855_v42, -1e+30  ;;  %vm788_vm5 = vmand %vm772_vm2, %vm780_vm4  ;;  %v865_v24 = vsel %vm3750_vm1, %v857_v48, -1e+30  ;;  %v728_v43 = vsub.f32 %v3673_v11, %v3615_v23  ;;  %v828_v42 = vmul.f32 %v3685_v26, %v3702_v41 }
 0x2d0   : > { %v876_v8 = vrot.slane %v863_v54, 4  ;;  %vm3774_vm7 = vmand %vm788_vm5, %vm800_vm3  ;;  %v888_v13 = vrot.slane %v865_v24, 4  ;;  %v2128_v63 = vmax.f32 %v2120_v55, 0.0  ;;  %vm782_vm10 = vcmp.ge.f32.partialorder %v3742_v18, 0.0 }
 0x2d1   : > { %v862_v19 = vsel %vm3774_vm7, %v854_v51, -1e+30  ;;  %vm774_vm9 = vmand %vm758_vm6, %vm766_vm8  ;;  %v848_v0 = vmul.f32 %v3724_v57, %v3742_v18  ;;  %v729_v21 = vsub.f32 %v709_v45, %v3628_v44  ;;  %v836_v34 = vadd.f32 %v828_v42, %v816_v12 }
 0x2d2   : > { %v877_v50 = vmax.f32 %v863_v54, %v876_v8  ;;  %v870_v16 = vrot.slane %v862_v19, 4  ;;  %v889_v48 = vmax.f32 %v865_v24, %v888_v13  ;;  %vm790_vm12 = vmand %vm774_vm9, %vm782_vm10  ;;  %v2134_v11 = vsub.f32 0.0, %v2126_v59 }
 0x2d3   : > { %v856_v32 = vadd.f32 %v848_v0, %v836_v34  ;;  %v3800_v44 = vmul.f32 %v727_v35, %v3645_v56  ;;  %v2117_v12 = vsub.f32 0.0, %v2109_v14  ;;  %vm3804_vm13 = vmand %vm790_vm12, %vm800_vm3  ;;  %v3809_v23 = vmul.f32 %v729_v21, %v3645_v56 }
 0x2d4   : > { %v878_v10 = vrot.slane %v877_v50, 2  ;;  %v871_v51 = vmax.f32 %v862_v19, %v870_v16  ;;  %v890_v8 = vrot.slane %v889_v48, 2  ;;  %v2136_v16 = vsub.f32 0.0, %v2128_v63 }
 0x2d5   : > { %v864_v0 = vsel %vm3804_vm13, %v856_v32, -1e+30  ;;  %v3815_v35 = vmul.f32 %v3724_v57, %v3800_v44  ;;  %v3831_v38 = vmax.f32 %v2117_v12, 0.0 }
 0x2d6   : > { %v879_v55 = vmax.f32 %v877_v50, %v878_v10  ;;  %v872_v33 = vrot.slane %v871_v51, 2  ;;  %v891_v45 = vmax.f32 %v889_v48, %v890_v8  ;;  %v2142_v48 = vmul.f32 %v2134_v11, %v2126_v59 }
 0x2d7   : > { %v882_v10 = vrot.slane %v864_v0, 4  ;;  %v3819_v8 = vmul.f32 %v3724_v57, %v3809_v23  ;;  %v2144_v13 = vmul.f32 %v2136_v16, %v2128_v63 }
 0x2d8   : > { %v880_v50 = vrot.slane %v879_v55, 1  ;;  %v873_v34 = vmax.f32 %v871_v51, %v872_v33  ;;  %v892_v14 = vrot.slane %v891_v45, 1  ;;  %v4469_v33 = vsub.f32 %v3603_v5, %v3634_v47 }
 0x2d9   : > { %v883_v59 = vmax.f32 %v864_v0, %v882_v10  ;;  %v2150_v47 = vmul.f32 7000.0, %v2142_v48  ;;  %v2152_v37 = vmul.f32 7000.0, %v2144_v13 }
 0x2da   : > { %v3821_v30 = vmax.f32 %v879_v55, %v880_v50  ;;  %v874_v21 = vrot.slane %v873_v34, 1  ;;  %v3827_v51 = vmul.f32 %v3645_v56, %v4469_v33  ;;  %v3829_v32 = vmax.f32 %v891_v45, %v892_v14 }
 0x2db   : > { %v3837_v55 = vmul.f32 %v728_v43, %v3645_v56  ;;  %v884_v63 = vrot.slane %v883_v59, 2  ;;  %v2159_v31 = vmul.f32 1.442695, %v2150_v47  ;;  %v2163_v1 = vmul.f32 1.442695, %v2152_v37 }
 0x2dc   : > { %4468 = vst [vmem:[#allocation36_spill] sm:$0xff] %v3821_v30  ;;  %4470 = vst [vmem:[#allocation37_spill] sm:$0xff] %v3829_v32  ;;  %vm922_vm14 = vcmp.ge.f32.partialorder %v863_v54, %v3821_v30  ;;  %v3834_v11 = vmax.f32 %v873_v34, %v874_v21  ;;  %v744_v50 = vsub.f32 1.0, %v3827_v51  ;;  %vm924_vm0 = vcmp.ge.f32.partialorder %v865_v24, %v3829_v32 }
 0x2dd   : > { %vm3842_vm15 = vmand %vm3728_vm11, %vm922_vm14  ;;  %v2103_v54 = vmin.f32 %v3756_v25, %v3702_v41  ;;  %v831_v24 = vmul.f32 %v3685_v26, %v3827_v51  ;;  %v885_v34 = vmax.f32 %v883_v59, %v884_v63  ;;  %v851_v63 = vmul.f32 %v3724_v57, %v3837_v55 }
 0x2de   : > { %4471 = vst [vmem:[#allocation38_spill] sm:$0xff] %v3834_v11  ;;  %v938_v43 = vsel %vm3842_vm15, %v3581_v40, 8.0  ;;  %vm3854_vm2 = vmand %vm3750_vm1, %vm924_vm0  ;;  %vm921_vm11 = vcmp.ge.f32.partialorder %v862_v19, %v3834_v11  ;;  %v3860_v58 = vsub.f32 %v744_v50, %v3837_v55  ;;  %vm769_vm1 = vcmp.ge.f32.partialorder %v3827_v51, 0.0 }
 0x2df   : > { %v951_v16 = vrot.slane %v938_v43, 4  ;;  %v940_v12 = vsel %vm3854_vm2, %v3581_v40, 8.0  ;;  %vm3869_vm4 = vmand %vm3774_vm7, %vm921_vm11  ;;  %v886_v9 = vrot.slane %v885_v34, 1  ;;  %vm785_vm7 = vcmp.ge.f32.partialorder %v3837_v55, 0.0 }
 0x2e0   : > { %v963_v19 = vrot.slane %v940_v12, 4  ;;  %v937_v48 = vsel %vm3869_vm4, %v3581_v40, 8.0  ;;  %vm761_vm5 = vcmp.ge.f32.partialorder %v3860_v58, 0.0  ;;  %v819_v14 = vmul.f32 %v3623_v39, %v3860_v58 }
 0x2e1   : > { %v952_v10 = vmin.f32 %v938_v43, %v951_v16  ;;  %v945_v21 = vrot.slane %v937_v48, 4  ;;  %vm777_vm6 = vmand %vm761_vm5, %vm769_vm1  ;;  %v2106_v32 = vmin.f32 %v3860_v58, %v3827_v51  ;;  %v2133_v43 = vsub.f32 0.0, %v3831_v38 }
 0x2e2   : > { %v964_v33 = vmin.f32 %v940_v12, %v963_v19  ;;  %vm3881_vm8 = vmand %vm777_vm6, %vm785_vm7  ;;  %v839_v50 = vadd.f32 %v831_v24, %v819_v14  ;;  %v3890_v16 = vmax.f32 %v885_v34, %v886_v9  ;;  %v4480_v19 = vsub.f32 %v3607_v7, %v3649_v60 }
 0x2e3   : > { %v953_v30 = vrot.slane %v952_v10, 2  ;;  %v946_v11 = vmin.f32 %v937_v48, %v945_v21  ;;  %vm3903_vm10 = vmand %vm3881_vm8, %vm800_vm3  ;;  %2827 = vpow2.f32 %v2159_v31 }
 0x2e4   : > { %v965_v36 = vrot.slane %v964_v33, 2  ;;  %v859_v12 = vadd.f32 %v851_v63, %v839_v50  ;;  %v3896_v24 = vmul.f32 %v3645_v56, %v4480_v19  ;;  %vm923_vm9 = vcmp.ge.f32.partialorder %v864_v0, %v3890_v16 }
 0x2e5   : > { %v954_v14 = vmin.f32 %v952_v10, %v953_v30  ;;  %v947_v28 = vrot.slane %v946_v11, 2  ;;  %vm3909_vm12 = vmand %vm3804_vm13, %vm923_vm9  ;;  %v2111_v30 = vmin.f32 %v2103_v54, %v3742_v18  ;;  %v3919_v0 = vmin.f32 %v2106_v32, %v3837_v55 }
 0x2e6   : > { %v966_v13 = vmin.f32 %v964_v33, %v965_v36  ;;  %v3916_v60 = vsel %vm3903_vm10, %v859_v12, -1e+30  ;;  %v939_v36 = vsel %vm3909_vm12, %v3581_v40, 8.0  ;;  %vm1041_vm13 = vcmask 64512  }
 0x2e7   : > { %v955_v47 = vrot.slane %v954_v14, 1  ;;  %v948_v48 = vmin.f32 %v946_v11, %v947_v28  ;;  %v900_v42 = vrot.slane %v3916_v60, 4  ;;  %v957_v21 = vrot.slane %v939_v36, 4 }
 0x2e8   : > { %v967_v10 = vrot.slane %v966_v13, 1  ;;  %v4485_v54 = vsub.f32 %v3765_v53, %v3636_v49  ;;  %v746_v32 = vsub.f32 1.0, %v3896_v24  ;;  %v2141_v28 = vmul.f32 %v2133_v43, %v3831_v38 }
 0x2e9   : > { %v956_v33 = vmin.f32 %v954_v14, %v955_v47  ;;  %v949_v59 = vrot.slane %v948_v48, 1  ;;  %v901_v11 = vmax.f32 %v3916_v60, %v900_v42  ;;  %v958_v63 = vmin.f32 %v939_v36, %v957_v21 }
 0x2ea   : > { %v3929_v9 = vmul.f32 %v4485_v54, %v3645_v56  ;;  %v968_v50 = vmin.f32 %v966_v13, %v967_v10  ;;  %v2119_v12 = vsub.f32 0.0, %v2111_v30  ;;  %v2122_v54 = vsub.f32 0.0, %v3919_v0 }
 0x2eb   : > { %vm994_vm14 = vcmp.eq.f32.partialorder %v3581_v40, %v956_v33  ;;  %v950_v49 = vmin.f32 %v948_v48, %v949_v59  ;;  %v902_v53 = vrot.slane %v901_v11, 2  ;;  %v959_v38 = vrot.slane %v958_v63, 2 }
 0x2ec   : > { %v3936_v19 = vsub.f32 %v746_v32, %v3929_v9  ;;  %vm1002_vm0 = vmand %vm3842_vm15, %vm994_vm14  ;;  %vm996_vm11 = vcmp.eq.f32.partialorder %v3581_v40, %v968_v50  ;;  %vm771_vm5 = vcmp.ge.f32.partialorder %v3896_v24, 0.0  ;;  %v4486_v43 = vmov 0.0  }
 0x2ed   : > { %v3946_v14 = vsel %vm1002_vm0, 1.0, %v4486_v43  ;;  %vm1004_vm6 = vmand %vm3854_vm2, %vm996_vm11  ;;  %vm993_vm7 = vcmp.eq.f32.partialorder %v3581_v40, %v950_v49  ;;  %v903_v13 = vmax.f32 %v901_v11, %v902_v53  ;;  %v960_v47 = vmin.f32 %v958_v63, %v959_v38 }
 0x2ee   : > { %vm763_vm1 = vcmp.ge.f32.partialorder %v3936_v19, 0.0  ;;  %v821_v5 = vmul.f32 %v3623_v39, %v3936_v19  ;;  %v1034_v30 = vmul.f32 %v3946_v14, %v3652_v61  ;;  %v3956_v0 = vsel %vm1004_vm6, 1.0, %v4486_v43  ;;  %vm1001_vm15 = vmand %vm3869_vm4, %vm993_vm7 }
 0x2ef   : > { %vm787_vm8 = vcmp.ge.f32.partialorder %v3929_v9, 0.0  ;;  %v1036_v45 = vmul.f32 %v3956_v0, %v3664_v4  ;;  %v3964_v48 = vsel %vm1001_vm15, 1.0, %v4486_v43  ;;  %v904_v36 = vrot.slane %v903_v13, 1  ;;  %vm779_vm2 = vmand %vm763_vm1, %vm771_vm5  ;;  %v3977_v4 = vld [vmem:[%s3974_s0 + $0x8] sm:$0xff] }
 0x2f0   : > { %v833_v61 = vmul.f32 %v3685_v26, %v3896_v24  ;;  %1045 = vmatprep.subr.mxu0 %v1034_v30  ;;  %v1033_v42 = vmul.f32 %v3964_v48, %v3667_v46  ;;  %v961_v10 = vrot.slane %v960_v47, 1  ;;  %vm795_vm4 = vmand %vm779_vm2, %vm787_vm8  ;;  %v2127_v21 = vmax.f32 %v2119_v12, 0.0 }
 0x2f1   : > { %1116 = vmatprep.subr.mxu1 %v1036_v45  ;;  %v3979_v32 = vmax.f32 %v903_v13, %v904_v36  ;;  %v853_v31 = vmul.f32 %v3724_v57, %v3929_v9  ;;  %v3983_v37 = vmul.f32 7000.0, %v2141_v28  ;;  %v2108_v59 = vmin.f32 %v3936_v19, %v3896_v24  ;;  %vm3999_vm14 = vmand %vm795_vm4, %vm800_vm3 }
 0x2f2   : > { %v841_v33 = vadd.f32 %v833_v61, %v821_v5  ;;  %1046 = vmatpush1.msra.mxu0 %v1033_v42  ;;  %v962_v46 = vmin.f32 %v960_v47, %v961_v10  ;;  %v4488_v11 = vsub.f32 %v3601_v2, %v3631_v29  ;;  %v2130_v57 = vmax.f32 %v2122_v54, 0.0  ;;  %v4051_v42 = vpop.eup %2827 }
 0x2f3   : > { %4487 = vst [vmem:[#allocation39_spill] sm:$0xff] %v3979_v32  ;;  %2653 = vmatmul.mubr.msk.f32.vlgmr.msra.gmra.mrb[0].mxu0 %vm1041_vm13, %v3977_v4  ;;  %vm926_vm9 = vcmp.ge.f32.partialorder %v3916_v60, %v3979_v32  ;;  %v4491_v2 = vsub.f32 %v3605_v6, %v3642_v52  ;;  %2829 = vpow2.f32 %v2163_v1  ;;  %v2116_v12 = vmin.f32 %v2108_v59, %v3929_v9 }
 0x2f4   : > { %v3991_v50 = vmul.f32 %v3645_v56, %v4488_v11  ;;  %v861_v63 = vadd.f32 %v853_v31, %v841_v33  ;;  %vm995_vm0 = vcmp.eq.f32.partialorder %v3581_v40, %v962_v46  ;;  %vm4012_vm11 = vmand %vm3903_vm10, %vm926_vm9  ;;  %1251 = vmatprep.mubr.f32.mxu0 %v4486_v43  ;;  %v2135_v6 = vsub.f32 0.0, %v2127_v21 }
 0x2f5   : > { %v4007_v29 = vmul.f32 %v3645_v56, %v4491_v2  ;;  %vm1003_vm1 = vmand %vm3909_vm12, %vm995_vm0  ;;  %v942_v52 = vsel %vm4012_vm11, %v3581_v40, 8.0  ;;  %v2124_v13 = vsub.f32 0.0, %v2116_v12  ;;  %v2138_v5 = vsub.f32 0.0, %v2130_v57 }
 0x2f6   : > { %v743_v49 = vsub.f32 1.0, %v3991_v50  ;;  %v4026_v56 = vsel %vm3999_vm14, %v861_v63, -1e+30  ;;  %v4030_v53 = vsel %vm1003_vm1, 1.0, %v4486_v43  ;;  %v975_v54 = vrot.slane %v942_v52, 4 }
 0x2f7   : > { %v745_v34 = vsub.f32 1.0, %v4007_v29  ;;  %v912_v38 = vrot.slane %v4026_v56, 4  ;;  %v1035_v7 = vmul.f32 %v4030_v53, %v3702_v41  ;;  %v830_v47 = vmul.f32 %v3685_v26, %v3991_v50 }
 0x2f8   : > { %v4036_v30 = vsub.f32 %v743_v49, %v3800_v44  ;;  %v976_v45 = vmin.f32 %v942_v52, %v975_v54  ;;  %vm784_vm10 = vcmp.ge.f32.partialorder %v3800_v44, 0.0  ;;  %vm768_vm5 = vcmp.ge.f32.partialorder %v3991_v50, 0.0 }
 0x2f9   : > { %v913_v36 = vmax.f32 %v4026_v56, %v912_v38  ;;  %v4043_v61 = vsub.f32 %v745_v34, %v3809_v23  ;;  %1117 = vmatpush1.msra.mxu1 %v1035_v7  ;;  %v2132_v31 = vmax.f32 %v2124_v13, 0.0  ;;  %v2143_v46 = vmul.f32 %v2135_v6, %v2127_v21 }
 0x2fa   : > { %vm760_vm12 = vcmp.ge.f32.partialorder %v4036_v30, 0.0  ;;  %v818_v41 = vmul.f32 %v3623_v39, %v4036_v30  ;;  %v2105_v1 = vmin.f32 %v4036_v30, %v3991_v50  ;;  %2654 = vmatmul.mubr.msk.f32.vlgmr.msra.gmra.mrb[0].mxu1 %vm1041_vm13, %v3977_v4  ;;  %v977_v10 = vrot.slane %v976_v45, 2 }
 0x2fb   : > { %v914_v33 = vrot.slane %v913_v36, 2  ;;  %vm776_vm6 = vmand %vm760_vm12, %vm768_vm5  ;;  %vm762_vm7 = vcmp.ge.f32.partialorder %v4043_v61, 0.0  ;;  %v820_v2 = vmul.f32 %v3623_v39, %v4043_v61  ;;  %1322 = vmatprep.mubr.f32.mxu1 %v4486_v43  ;;  %vm770_vm8 = vcmp.ge.f32.partialorder %v4007_v29, 0.0 }
 0x2fc   : > { %vm4058_vm15 = vmand %vm776_vm6, %vm784_vm10  ;;  %v838_v11 = vadd.f32 %v830_v47, %v818_v41  ;;  %v2113_v63 = vmin.f32 %v2105_v1, %v3800_v44  ;;  %v978_v12 = vmin.f32 %v976_v45, %v977_v10  ;;  %v832_v21 = vmul.f32 %v3685_v26, %v4007_v29 }
 0x2fd   : > { %v915_v49 = vmax.f32 %v913_v36, %v914_v33  ;;  %v2146_v6 = vmul.f32 %v2138_v5, %v2130_v57  ;;  %vm778_vm2 = vmand %vm762_vm7, %vm770_vm8  ;;  %v2107_v54 = vmin.f32 %v4043_v61, %v4007_v29  ;;  %v4072_v38 = vpop.eup %2829  ;;  %v2140_v7 = vsub.f32 0.0, %v2132_v31 }
 0x2fe   : > { %v858_v52 = vadd.f32 %v3815_v35, %v838_v11  ;;  %v2121_v34 = vsub.f32 0.0, %v2113_v63  ;;  %v979_v39 = vrot.slane %v978_v12, 1  ;;  %vm4078_vm4 = vmand %vm4058_vm15, %vm800_vm3  ;;  %vm786_vm9 = vcmp.ge.f32.partialorder %v3809_v23, 0.0 }
 0x2ff   : > { %v916_v13 = vrot.slane %v915_v49, 1  ;;  %vm4085_vm0 = vmand %vm778_vm2, %vm786_vm9  ;;  %v840_v5 = vadd.f32 %v832_v21, %v820_v2  ;;  %v2115_v45 = vmin.f32 %v2107_v54, %v3809_v23  ;;  %v2151_v36 = vmul.f32 7000.0, %v2143_v46 }
 0x300   : > { %v866_v26 = vsel %vm4078_vm4, %v858_v52, -1e+30  ;;  %v2129_v35 = vmax.f32 %v2121_v34, 0.0  ;;  %v980_v41 = vmin.f32 %v978_v12, %v979_v39  ;;  %v2157_v33 = vmul.f32 1.442695, %v3983_v37  ;;  %vm4101_vm12 = vmand %vm4085_vm0, %vm800_vm3 }
 0x301   : > { %v4090_v1 = vmax.f32 %v915_v49, %v916_v13  ;;  %v894_v10 = vrot.slane %v866_v26, 4  ;;  %v860_v11 = vadd.f32 %v3819_v8, %v840_v5  ;;  %v2123_v63 = vsub.f32 0.0, %v2115_v45 }
 0x302   : > { %v2137_v59 = vsub.f32 0.0, %v2129_v35  ;;  %vm998_vm1 = vcmp.eq.f32.partialorder %v3581_v40, %v980_v41  ;;  %v2148_v52 = vmul.f32 %v2140_v7, %v2132_v31  ;;  %v2154_v8 = vmul.f32 7000.0, %v2146_v6 }
 0x303   : > { %4500 = vst [vmem:[#allocation40_spill] sm:$0xff] %v4090_v1  ;;  %vm928_vm10 = vcmp.ge.f32.partialorder %v4026_v56, %v4090_v1  ;;  %v895_v2 = vmax.f32 %v866_v26, %v894_v10  ;;  %vm1006_vm5 = vmand %vm4012_vm11, %vm998_vm1  ;;  %v868_v12 = vsel %vm4101_vm12, %v860_v11, -1e+30  ;;  %v2131_v49 = vmax.f32 %v2123_v63, 0.0 }
 0x304   : > { %v2145_v37 = vmul.f32 %v2137_v59, %v2129_v35  ;;  %v2161_v56 = vmul.f32 1.442695, %v2151_v36  ;;  %v4110_v31 = vsel %vm1006_vm5, 1.0, %v4486_v43  ;;  %vm4114_vm6 = vmand %vm3999_vm14, %vm928_vm10  ;;  %v906_v54 = vrot.slane %v868_v12, 4 }
 0x305   : > { %v896_v34 = vrot.slane %v895_v2, 2  ;;  %v1038_v60 = vmul.f32 %v4110_v31, %v3827_v51  ;;  %v944_v6 = vsel %vm4114_vm6, %v3581_v40, 8.0  ;;  %v2139_v13 = vsub.f32 0.0, %v2131_v49 }
 0x306   : > { %v2153_v39 = vmul.f32 7000.0, %v2145_v37  ;;  %v987_v7 = vrot.slane %v944_v6, 4  ;;  %v2156_v35 = vmul.f32 7000.0, %v2148_v52  ;;  %v907_v5 = vmax.f32 %v868_v12, %v906_v54 }
 0x307   : > { %v897_v57 = vmax.f32 %v895_v2, %v896_v34  ;;  %2831 = vpow2.f32 %v2157_v33  ;;  %1187 = vmatprep.subr.mxu0 %v1038_v60  ;;  %v2167_v28 = vmul.f32 1.442695, %v2154_v8  ;;  %v2147_v45 = vmul.f32 %v2139_v13, %v2131_v49 }
 0x308   : > { %v988_v36 = vmin.f32 %v944_v6, %v987_v7  ;;  %v2165_v10 = vmul.f32 1.442695, %v2153_v39  ;;  %v908_v59 = vrot.slane %v907_v5, 2  ;;  %2833 = vpow2.f32 %v2161_v56 }
 0x309   : > { %v898_v41 = vrot.slane %v897_v57, 1  ;;  %v2155_v51 = vmul.f32 7000.0, %v2147_v45  ;;  %v2171_v63 = vmul.f32 1.442695, %v2156_v35  ;;  %2835 = vpow2.f32 %v2167_v28 }
 0x30a   : > { %v989_v11 = vrot.slane %v988_v36, 2  ;;  %v909_v37 = vmax.f32 %v907_v5, %v908_v59  ;;  %2837 = vpow2.f32 %v2165_v10  ;;  %v2174_v10 = vsel %vm800_vm3, %v4051_v42, 0.0 }
 0x30b   : > { %v4123_v1 = vmax.f32 %v897_v57, %v898_v41  ;;  %v2169_v32 = vmul.f32 1.442695, %v2155_v51 }
 0x30c   : > { %v990_v52 = vmin.f32 %v988_v36, %v989_v11  ;;  %v910_v33 = vrot.slane %v909_v37, 1  ;;  %v2176_v11 = vsel %vm800_vm3, %v4072_v38, 0.0 }
 0x30d   : > { %vm925_vm14 = vcmp.ge.f32.partialorder %v866_v26, %v4123_v1  ;;  %2839 = vpow2.f32 %v2169_v32 }
 0x30e   : > { %vm4128_vm11 = vmand %vm4078_vm4, %vm925_vm14  ;;  %v991_v8 = vrot.slane %v990_v52, 1  ;;  %2841 = vpow2.f32 %v2171_v63  ;;  %v4135_v56 = vmax.f32 %v909_v37, %v910_v33 }
 0x30f   : > { %v941_v49 = vsel %vm4128_vm11, %v3581_v40, 8.0 }
 0x310   : > { %v969_v34 = vrot.slane %v941_v49, 4  ;;  %v992_v54 = vmin.f32 %v990_v52, %v991_v8  ;;  %vm927_vm7 = vcmp.ge.f32.partialorder %v868_v12, %v4135_v56 }
 0x311   : > { %v2832_v26 = vpop.eup %2831  ;;  %vm4140_vm15 = vmand %vm4101_vm12, %vm927_vm7 }
 0x312   : > { %v970_v60 = vmin.f32 %v941_v49, %v969_v34  ;;  %vm1000_vm8 = vcmp.eq.f32.partialorder %v3581_v40, %v992_v54  ;;  %v943_v32 = vsel %vm4140_vm15, %v3581_v40, 8.0  ;;  %v2834_v6 = vpop.eup %2833  ;;  %v2173_v21 = vsel %vm800_vm3, %v2832_v26, 0.0 }
 0x313   : > { %vm1008_vm2 = vmand %vm4114_vm6, %vm1000_vm8  ;;  %v981_v12 = vrot.slane %v943_v32, 4  ;;  %v2836_v46 = vpop.eup %2835  ;;  %v2175_v59 = vsel %vm800_vm3, %v2834_v6, 0.0  ;;  %v2181_v33 = vsub.f32 1.0, %v2173_v21  ;;  %v2182_v49 = vsub.f32 1.0, %v2174_v10 }
 0x314   : > { %v971_v39 = vrot.slane %v970_v60, 2  ;;  %v4151_v13 = vsel %vm1008_vm2, 1.0, %v4486_v43  ;;  %v2838_v5 = vpop.eup %2837  ;;  %v2178_v37 = vsel %vm800_vm3, %v2836_v46, 0.0  ;;  %v2183_v38 = vsub.f32 1.0, %v2175_v59 }
 0x315   : > { %v1040_v7 = vmul.f32 %v4151_v13, %v3896_v24  ;;  %v982_v57 = vmin.f32 %v943_v32, %v981_v12  ;;  %v2177_v63 = vsel %vm800_vm3, %v2838_v5, 0.0  ;;  %v2184_v34 = vsub.f32 1.0, %v2176_v11 }
 0x316   : > { %v972_v35 = vmin.f32 %v970_v60, %v971_v39  ;;  %v2185_v54 = vsub.f32 1.0, %v2177_v63  ;;  %v1026_v32 = vmul.f32 %v3946_v14, %v3689_v15  ;;  %v2186_v6 = vsub.f32 1.0, %v2178_v37 }
 0x317   : > { %v2840_v28 = vpop.eup %2839  ;;  %1258 = vmatprep.subr.mxu1 %v1040_v7  ;;  %v983_v36 = vrot.slane %v982_v57, 2  ;;  %v2224_v46 = vmax.f32 %v2181_v33, 1e-20  ;;  %v2225_v2 = vmax.f32 %v2182_v49, 1e-20  ;;  %v1616_v21 = vmul.f32 %v3964_v48, %v3682_v22 }
 0x318   : > { %v973_v45 = vrot.slane %v972_v35, 1  ;;  %v2842_v41 = vpop.eup %2841  ;;  %v2179_v52 = vsel %vm800_vm3, %v2840_v28, 0.0  ;;  %v2226_v7 = vmax.f32 %v2183_v38, 1e-20  ;;  %v2228_v15 = vmax.f32 %v2185_v54, 1e-20 }
 0x319   : > { %v984_v24 = vmin.f32 %v982_v57, %v983_v36  ;;  %v2180_v8 = vsel %vm800_vm3, %v2842_v41, 0.0  ;;  %v2187_v3 = vsub.f32 1.0, %v2179_v52  ;;  %v1025_v57 = vmul.f32 %v3964_v48, %v3699_v27 }
 0x31a   : > { %v974_v51 = vmin.f32 %v972_v35, %v973_v45  ;;  %v2188_v12 = vsub.f32 1.0, %v2180_v8  ;;  %v2227_v35 = vmax.f32 %v2184_v34, 1e-20  ;;  %2843 = vlog2.f32 %v2224_v46 }
 0x31b   : > { %v985_v42 = vrot.slane %v984_v24, 1  ;;  %2845 = vlog2.f32 %v2225_v2  ;;  %v2230_v47 = vmax.f32 %v2187_v3, 1e-20  ;;  %v1028_v28 = vmul.f32 %v3956_v0, %v3696_v20 }
 0x31c   : > { %vm997_vm4 = vcmp.eq.f32.partialorder %v3581_v40, %v974_v51  ;;  %2847 = vlog2.f32 %v2226_v7  ;;  %v2231_v45 = vmax.f32 %v2188_v12, 1e-20  ;;  %v1027_v36 = vmul.f32 %v4030_v53, %v3756_v25 }
 0x31d   : > { %vm1005_vm9 = vmand %vm4128_vm11, %vm997_vm4  ;;  %v986_v60 = vmin.f32 %v984_v24, %v985_v42  ;;  %2849 = vlog2.f32 %v2227_v35  ;;  %v1617_v25 = vmul.f32 %v3946_v14, %v3655_v62  ;;  %v1621_v14 = vmul.f32 %v4110_v31, %v3837_v55 }
 0x31e   : > { %v4177_v26 = vsel %vm1005_vm9, 1.0, %v4486_v43  ;;  %2851 = vlog2.f32 %v2228_v15  ;;  %v1618_v10 = vmul.f32 %v4030_v53, %v3742_v18  ;;  %v1623_v48 = vmul.f32 %v4151_v13, %v3929_v9 }
 0x31f   : > { %v1037_v39 = vmul.f32 %v4177_v26, %v3991_v50  ;;  %vm999_vm3 = vcmp.eq.f32.partialorder %v3581_v40, %v986_v60  ;;  %v1030_v40 = vmul.f32 %v4110_v31, %v3860_v58  ;;  %v2229_v50 = vmax.f32 %v2186_v6, 1e-20  ;;  %v514_v58 = vld [vmem:[%s3974_s0] sm:$0xff] }
 0x320   : > { %vm1007_vm0 = vmand %vm4140_vm15, %vm999_vm3  ;;  %v1029_v20 = vmul.f32 %v4177_v26, %v4036_v30  ;;  %v1620_v18 = vmul.f32 %v4177_v26, %v3800_v44 }
 0x321   : > { %1188 = vmatpush1.msra.mxu0 %v1037_v39  ;;  %v4189_v5 = vsel %vm1007_vm0, 1.0, %v4486_v43  ;;  %2853 = vlog2.f32 %v2229_v50 }
 0x322   : > { %1332 = vmatprep.subr.mxu0 %v1026_v32  ;;  %2655 = vmatmul.mubr.msk.f32.vlgmr.msra.gmra.mrb[2].mxu0 %vm1041_vm13, %v3977_v4  ;;  %v1039_v27 = vmul.f32 %v4189_v5, %v4007_v29  ;;  %v1032_v29 = vmul.f32 %v4151_v13, %v3936_v19  ;;  %2855 = vlog2.f32 %v2230_v47  ;;  %v1619_v19 = vmul.f32 %v3956_v0, %v3678_v17  ;;  %v516_v17 = vld [vmem:[%s3974_s0 + $0x10] sm:$0xff] }
 0x323   : > { %1333 = vmatpush1.msra.mxu0 %v1025_v57  ;;  %1396 = vmatprep.mubr.f32.mxu0 %v4486_v43  ;;  %2857 = vlog2.f32 %v2231_v45  ;;  %v1622_v9 = vmul.f32 %v4189_v5, %v3809_v23 }
 0x324   : > { %1474 = vmatprep.subr.mxu0 %v1030_v40  ;;  %1259 = vmatpush1.msra.mxu1 %v1039_v27  ;;  %v2844_v30 = vpop.eup %2843 }
 0x325   : > { %1403 = vmatprep.subr.mxu1 %v1028_v28  ;;  %2656 = vmatmul.mubr.msk.f32.vlgmr.msra.gmra.mrb[2].mxu1 %vm1041_vm13, %v3977_v4  ;;  %v1031_v4 = vmul.f32 %v4189_v5, %v4043_v61  ;;  %v2846_v62 = vpop.eup %2845  ;;  %v2233_v61 = vmul.f32 0.6931472, %v2844_v30 }
 0x326   : > { %1404 = vmatpush1.msra.mxu1 %v1027_v36  ;;  %1467 = vmatprep.mubr.f32.mxu1 %v4486_v43  ;;  %v2848_v41 = vpop.eup %2847  ;;  %v2235_v22 = vmul.f32 0.6931472, %v2846_v62 }
 0x327   : > { %1545 = vmatprep.subr.mxu1 %v1032_v29  ;;  %2657 = vmatmul.mubr.msk.f32.vlgmr.msra.gmra.mrb[0].mxu0 %vm1041_vm13, %v514_v58  ;;  %v2850_v0 = vpop.eup %2849  ;;  %v2237_v59 = vmul.f32 0.6931472, %v2848_v41  ;;  %v2248_v51 = vrot.slane %v2233_v61, 4 }
 0x328   : > { %1475 = vmatpush1.msra.mxu0 %v1029_v20  ;;  %1538 = vmatprep.mubr.f32.mxu0 %v4486_v43  ;;  %v2852_v55 = vpop.eup %2851  ;;  %v2239_v53 = vmul.f32 0.6931472, %v2850_v0  ;;  %v2254_v31 = vrot.slane %v2235_v22, 4 }
 0x329   : > { %2658 = vmatmul.mubr.msk.f32.vlgmr.msra.gmra.mrb[0].mxu1 %vm1041_vm13, %v514_v58  ;;  %1627 = vmatprep.subr.mxu0 %v1617_v25  ;;  %v2241_v11 = vmul.f32 0.6931472, %v2852_v55  ;;  %v2249_v63 = vadd.f32 %v2248_v51, %v2233_v61  ;;  %v2260_v37 = vrot.slane %v2237_v59, 4 }
 0x32a   : > { %1546 = vmatpush1.msra.mxu1 %v1031_v4  ;;  %1609 = vmatprep.mubr.f32.mxu1 %v4486_v43  ;;  %v2255_v33 = vadd.f32 %v2254_v31, %v2235_v22  ;;  %v2266_v42 = vrot.slane %v2239_v53, 4  ;;  %v3196_v31 = vmov 1966171168  }
 0x32b   : > { %1698 = vmatprep.subr.mxu1 %v1619_v19  ;;  %2659 = vmatmul.mubr.msk.f32.vlgmr.msra.gmra.mrb[2].mxu0 %vm1041_vm13, %v514_v58  ;;  %v2854_v24 = vpop.eup %2853  ;;  %v2250_v49 = vrot.slane %v2249_v63, 2  ;;  %v2261_v38 = vadd.f32 %v2260_v37, %v2237_v59  ;;  %v2272_v34 = vrot.slane %v2241_v11, 4 }
 0x32c   : > { %1628 = vmatpush1.msra.mxu0 %v1616_v21  ;;  %1691 = vmatprep.mubr.f32.mxu0 %v4486_v43  ;;  %v2856_v52 = vpop.eup %2855  ;;  %v2243_v13 = vmul.f32 0.6931472, %v2854_v24  ;;  %v2256_v26 = vrot.slane %v2255_v33, 2  ;;  %v2267_v60 = vadd.f32 %v2266_v42, %v2239_v53  ;;  %v1982_v24 = vunpack.c.l.s4 %v3196_v31  ;;  %v4509_v42 = vld [vmem:[#allocation27_spill] sm:$0xff] }
 0x32d   : > { %2660 = vmatmul.mubr.msk.f32.vlgmr.msra.gmra.mrb[2].mxu1 %vm1041_vm13, %v514_v58  ;;  %1769 = vmatprep.subr.mxu0 %v1621_v14  ;;  %v2858_v44 = vpop.eup %2857  ;;  %v2245_v8 = vmul.f32 0.6931472, %v2856_v52  ;;  %v2251_v23 = vadd.f32 %v2250_v49, %v2249_v63  ;;  %v2262_v6 = vrot.slane %v2261_v38, 2  ;;  %v2273_v39 = vadd.f32 %v2272_v34, %v2241_v11 }
 0x32e   : > { %1699 = vmatpush1.msra.mxu1 %v1618_v10  ;;  %1762 = vmatprep.mubr.f32.mxu1 %v4486_v43  ;;  %v2247_v54 = vmul.f32 0.6931472, %v2858_v44  ;;  %v2278_v32 = vrot.slane %v2243_v13, 4  ;;  %v2257_v12 = vadd.f32 %v2256_v26, %v2255_v33  ;;  %v2268_v46 = vrot.slane %v2267_v60, 2 }
 0x32f   : > { %1840 = vmatprep.subr.mxu1 %v1623_v48  ;;  %2661 = vmatmul.mubr.msk.f32.vlgmr.msra.gmra.mrb[0].mxu0 %vm1041_vm13, %v516_v17  ;;  %v2284_v3 = vrot.slane %v2245_v8, 4  ;;  %v2252_v35 = vrot.slane %v2251_v23, 1  ;;  %v2263_v57 = vadd.f32 %v2262_v6, %v2261_v38  ;;  %v2274_v15 = vrot.slane %v2273_v39, 2 }
 0x330   : > { %1770 = vmatpush1.msra.mxu0 %v1620_v18  ;;  %1833 = vmatprep.mubr.f32.mxu0 %v4486_v43  ;;  %v2279_v2 = vadd.f32 %v2278_v32, %v2243_v13  ;;  %v2290_v7 = vrot.slane %v2247_v54, 4  ;;  %v2258_v5 = vrot.slane %v2257_v12, 1  ;;  %v2269_v40 = vadd.f32 %v2268_v46, %v2267_v60 }
 0x331   : > { %2662 = vmatmul.mubr.msk.f32.vlgmr.msra.gmra.mrb[0].mxu1 %vm1041_vm13, %v516_v17  ;;  %v2253_v47 = vadd.f32 %v2252_v35, %v2251_v23  ;;  %v2264_v28 = vrot.slane %v2263_v57, 1  ;;  %v2275_v45 = vadd.f32 %v2274_v15, %v2273_v39  ;;  %v1983_v37 = vunpack.c.0.s8 %v1982_v24 }
 0x332   : > { %1841 = vmatpush1.msra.mxu1 %v1622_v9  ;;  %1904 = vmatprep.mubr.f32.mxu1 %v4486_v43  ;;  %v2285_v43 = vadd.f32 %v2284_v3, %v2245_v8  ;;  %v2280_v50 = vrot.slane %v2279_v2, 2  ;;  %v2291_v27 = vadd.f32 %v2290_v7, %v2247_v54  ;;  %v2259_v58 = vadd.f32 %v2258_v5, %v2257_v12 }
 0x333   : > { %2663 = vmatmul.mubr.msk.f32.vlgmr.msra.gmra.mrb[2].mxu0 %vm1041_vm13, %v516_v17  ;;  %v2270_v29 = vrot.slane %v2269_v40, 1  ;;  %v2265_v4 = vadd.f32 %v2264_v28, %v2263_v57  ;;  %v2276_v19 = vrot.slane %v2275_v45, 1  ;;  %v2296_v21 = vmul.f32 1.442695, %v2253_v47 }
 0x334   : > { %v2286_v36 = vrot.slane %v2285_v43, 2  ;;  %v2281_v20 = vadd.f32 %v2280_v50, %v2279_v2  ;;  %v2292_v25 = vrot.slane %v2291_v27, 2  ;;  %v2298_v41 = vmul.f32 1.442695, %v2259_v58 }
 0x335   : > { %2664 = vmatmul.mubr.msk.f32.vlgmr.msra.gmra.mrb[2].mxu1 %vm1041_vm13, %v516_v17  ;;  %v2271_v62 = vadd.f32 %v2270_v29, %v2269_v40  ;;  %v2277_v10 = vadd.f32 %v2276_v19, %v2275_v45  ;;  %2859 = vpow2.f32 %v2296_v21  ;;  %v2300_v22 = vmul.f32 1.442695, %v2265_v4 }
 0x336   : > { %v2287_v30 = vadd.f32 %v2286_v36, %v2285_v43  ;;  %v2282_v14 = vrot.slane %v2281_v20, 1  ;;  %v2293_v61 = vadd.f32 %v2292_v25, %v2291_v27  ;;  %2861 = vpow2.f32 %v2298_v41 }
 0x337   : > { %v2302_v59 = vmul.f32 1.442695, %v2271_v62  ;;  %2863 = vpow2.f32 %v2300_v22  ;;  %v2304_v55 = vmul.f32 1.442695, %v2277_v10  ;;  %v1986_v44 = vsub.s32 %v1983_v37, %v4509_v42 }
 0x338   : > { %v2288_v17 = vrot.slane %v2287_v30, 1  ;;  %v2283_v0 = vadd.f32 %v2282_v14, %v2281_v20  ;;  %v2294_v48 = vrot.slane %v2293_v61, 1 }
 0x339   : > { %2865 = vpow2.f32 %v2302_v59 }
 0x33a   : > { %v2289_v51 = vadd.f32 %v2288_v17, %v2287_v30  ;;  %v2295_v18 = vadd.f32 %v2294_v48, %v2293_v61  ;;  %v2306_v53 = vmul.f32 1.442695, %v2283_v0  ;;  %2867 = vpow2.f32 %v2304_v55 }
 0x33c   : > { %v2308_v11 = vmul.f32 1.442695, %v2289_v51  ;;  %2869 = vpow2.f32 %v2306_v53  ;;  %v2310_v63 = vmul.f32 1.442695, %v2295_v18 }
 0x33e   : > { %2871 = vpow2.f32 %v2308_v11 }
 0x33f   : > { %2873 = vpow2.f32 %v2310_v63  ;;  %v2860_v52 = vpop.eup %2859 }
 0x340   : > { %v2862_v9 = vpop.eup %2861  ;;  %v2312_v13 = vsub.f32 1.0, %v2860_v52 }
 0x341   : > { %v2864_v33 = vpop.eup %2863  ;;  %v2313_v8 = vsub.f32 1.0, %v2862_v9 }
 0x342   : > { %v2314_v38 = vsub.f32 1.0, %v2864_v33 }
 0x343   : > { %v2866_v49 = vpop.eup %2865  ;;  %v2328_v26 = vcombine.low %v2312_v13, %v2313_v8 }
 0x344   : > { %v2868_v34 = vpop.eup %2867  ;;  %v2315_v54 = vsub.f32 1.0, %v2866_v49 }
 0x345   : > { %v2316_v32 = vsub.f32 1.0, %v2868_v34  ;;  %v2338_v3 = vrot.slane %v2328_v26, %v1986_v44 }
 0x346   : > { %v2870_v60 = vpop.eup %2869  ;;  %v2329_v39 = vcombine.low %v2314_v38, %v2315_v54 }
 0x347   : > { %v2317_v6 = vsub.f32 1.0, %v2870_v60 }
 0x348   : > { %v2872_v23 = vpop.eup %2871  ;;  %v2345_v35 = vrot.slane %v2329_v39, %v1986_v44 }
 0x349   : > { %v2874_v12 = vpop.eup %2873  ;;  %v2318_v46 = vsub.f32 1.0, %v2872_v23  ;;  %v2330_v7 = vcombine.low %v2316_v32, %v2317_v6 }
 0x34a   : > { %v2319_v2 = vsub.f32 1.0, %v2874_v12  ;;  %v2360_v43 = vcombine.low %v2338_v3, %v2345_v35 }
 0x34b   : > { %v2352_v15 = vrot.slane %v2330_v7, %v1986_v44 }
 0x34c   : > { %v2331_v57 = vcombine.low %v2318_v46, %v2319_v2  ;;  %v2368_v50 = vrot.slane %v2360_v43, %v1986_v44 }
 0x34e   : > { %v2359_v5 = vrot.slane %v2331_v57, %v1986_v44 }
 0x350   : > { %v2361_v40 = vcombine.low %v2352_v15, %v2359_v5 }
 0x352   : > { %v2375_v27 = vrot.slane %v2361_v40, %v1986_v44 }
 0x354   : > { %v2376_v47 = vcombine.low %v2368_v50, %v2375_v27 }
 0x356   : > { %2378 = vst [vmem:[%s483_s15] sm:$0xff] %v2376_v47 }
 0x357   : > { %3064 = shalt.err (!%p3061_p9)
}
 0x358   : > { %s3065_s13 = scalar_lea.hbm %s4249_s8, 128  ;;  %s3069_s26 = scalar_lea.hbm %s4510_s14, 256 }
 0x359   : > { %p3066_p1 = scmp.ne.s32.totalorder %s4249_s8, %s3065_s13  ;;  %p3070_p12 = scmp.lt.u32.totalorder %s4249_s8, %s4510_s14 }
 0x35a   : > { %p3071_p2 = scmp.lt.u32.totalorder %s3069_s26, %s3065_s13  ;;  %p3073_p6 = scmp.lt.u32.totalorder %s3065_s13, %s4249_s8 }
 0x35b   : > { %p3067_p0 = pnand %p3066_p1, %p4511_p7 }
 0x35c   : > { %p3072_p10 = por %p3071_p2, %p3070_p12 }
 0x35d   : > { %p3068_p3 = pneg %p3067_p0 }
 0x35e   : > { %p3074_p8 = por %p3073_p6, %p3072_p10 }
 0x360   : > { %p3075_p4 = pnand %p3074_p8, %p3068_p3 }
 0x362   : > { %3078 = shalt.err (!%p3075_p4)
}
 0x363   : > { %2711 = dma.vmem_to_hbm [thread:$0]  (%p4511_p7), %s2418_s6, 128, %s4249_s8, %s2385_s29   ;;  %v3198_v28 = vmov -1e+30   ;;  %v4512_v45 = vld [vmem:[#allocation29_spill] sm:$0xff]  ;;  %v4513_v58 = vld [vmem:[#allocation34_spill] sm:$0xff]  ;;  %v4515_v4 = vld [vmem:[#allocation35_spill] sm:$0xff] }
 0x364   : > { %v1924_v36 = vrot.slane %v3198_v28, %v4512_v45  ;;  %v1928_v29 = vrot.slane %v3198_v28, %v4513_v58  ;;  %v4514_v20 = vld [vmem:[#allocation33_spill] sm:$0xff]  ;;  %v1936_v19 = vrot.slane %v3198_v28, %v4515_v4  ;;  %v4516_v30 = vld [vmem:[#allocation38_spill] sm:$0xff]  ;;  %v4517_v21 = vld [vmem:[#allocation28_spill] sm:$0xff]  ;;  %v4521_v22 = vmov 0   ;;  %s2643_s7 = sshll.u32 %s3537_s22, 6  ;;  %s2673_s17 = sshll.u32 %s3165_s27, 10 }
 0x365   : > { %v1932_v25 = vrot.slane %v3198_v28, %v4514_v20  ;;  %v1940_v62 = vrot.slane %v3198_v28, %v4517_v21  ;;  %v4518_v14 = vld [vmem:[#allocation36_spill] sm:$0xff]  ;;  %v4519_v61 = vld [vmem:[#allocation30_spill] sm:$0xff]  ;;  %v4520_v10 = vld [vmem:[#allocation31_spill] sm:$0xff]  ;;  %s4300_s9 = scalar_lea.vmem [#allocation13], %s2643_s7  ;;  %s4526_s27 = sld [smem:[#allocation43_spill]] }
 0x366   : > { %vm1961_vm13 = vcmp.gt.f32.partialorder %v4516_v30, %v1924_v36  ;;  %vm1962_vm1 = vcmp.gt.f32.partialorder %v4518_v14, %v1928_v29  ;;  %v1944_v41 = vrot.slane %v3198_v28, %v4519_v61  ;;  %v1948_v17 = vrot.slane %v3198_v28, %v4520_v10  ;;  %v4522_v48 = vld [vmem:[#allocation37_spill] sm:$0xff]  ;;  %v4523_v59 = vld [vmem:[#allocation32_spill] sm:$0xff]  ;;  %v4524_v53 = vld [vmem:[#allocation39_spill] sm:$0xff]  ;;  %s2401_s0 = sshll.u32 %s4300_s9, 4  ;;  %s2380_s23 = scalar_lea.sflag [#allocation6], %s3537_s22  ;;  %s4317_s0 = int_to_ptr.vmem [resolvable:$true] %s2401_s0 }
 0x367   : > { %vm1963_vm10 = vcmp.gt.f32.partialorder %v3890_v16, %v1932_v25  ;;  %v2037_v0 = vsel %vm1961_vm13, 1, %v4521_v22  ;;  %vm1964_vm12 = vcmp.gt.f32.partialorder %v4522_v48, %v1936_v19  ;;  %v1952_v51 = vrot.slane %v3198_v28, %v4523_v59  ;;  %v4525_v63 = vld [vmem:[#allocation40_spill] sm:$0xff]  ;;  %s3079_s8 = scalar_lea.vmem %s4317_s0, 1024  ;;  %s3199_s29 = smov [#allocation13]  }
 0x368   : > { %v2038_v55 = vsel %vm1962_vm1, 1, %v4521_v22  ;;  %vm1965_vm5 = vcmp.gt.f32.partialorder %v4123_v1, %v1940_v62  ;;  %v2039_v18 = vsel %vm1963_vm10, 1, %v4521_v22  ;;  %vm1966_vm6 = vcmp.gt.f32.partialorder %v4524_v53, %v1944_v41  ;;  %p3080_p13 = scmp.ne.s32.totalorder %s4317_s0, %s3079_s8  ;;  %s3083_s24 = sshll.u32 %s3199_s29, 4  ;;  %s3084_s24 = int_to_ptr.vmem [resolvable:$false] %s3083_s24 }
 0x369   : > { %v2048_v31 = vrot.slane %v2037_v0, %v4512_v45  ;;  %v2040_v16 = vsel %vm1964_vm12, 1, %v4521_v22  ;;  %vm1967_vm14 = vcmp.gt.f32.partialorder %v4135_v56, %v1948_v17  ;;  %v2052_v24 = vrot.slane %v2038_v55, %v4512_v45  ;;  %s3085_s12 = scalar_lea.vmem %s3084_s24, 2048  ;;  %p3086_p9 = scmp.lt.s32.totalorder %s4317_s0, %s3084_s24 }
 0x36a   : > { %v2041_v11 = vsel %vm1965_vm5, 1, %v4521_v22  ;;  %vm1968_vm11 = vcmp.gt.f32.partialorder %v4525_v63, %v1952_v51  ;;  %v2056_v37 = vrot.slane %v2039_v18, %v4512_v45  ;;  %v2042_v1 = vsel %vm1966_vm6, 1, %v4521_v22  ;;  %p3081_p5 = pnand %p3080_p13, %p4511_p7  ;;  %p3087_p1 = scmp.lt.s32.totalorder %s3085_s12, %s3079_s8 }
 0x36b   : > { %v2060_v52 = vrot.slane %v2040_v16, %v4512_v45  ;;  %v2043_v9 = vsel %vm1967_vm14, 1, %v4521_v22  ;;  %vm2077_vm7 = vcmp.eq.s32.totalorder %v2048_v31, 1  ;;  %v2064_v33 = vrot.slane %v2041_v11, %v4512_v45  ;;  %s4527_s6 = smov %s4526_s27  ;;  %s4315_s21 = scalar_lea.hbm %s4526_s27, %s2673_s17 }
 0x36c   : > { %v2044_v56 = vsel %vm1968_vm11, 1, %v4521_v22  ;;  %vm2078_vm15 = vcmp.eq.s32.totalorder %v2052_v24, 1  ;;  %v2068_v8 = vrot.slane %v2042_v1, %v4512_v45  ;;  %vm2079_vm8 = vcmp.eq.s32.totalorder %v2056_v37, 1  ;;  %p3082_p11 = pneg %p3081_p5  ;;  %p3088_p0 = por %p3087_p1, %p3086_p9 }
 0x36d   : > { %v2072_v34 = vrot.slane %v2043_v9, %v4512_v45  ;;  %vm2080_vm2 = vcmp.eq.s32.totalorder %v2060_v52, 1  ;;  %v2076_v60 = vrot.slane %v2044_v56, %v4512_v45  ;;  %vm2081_vm4 = vcmp.eq.s32.totalorder %v2064_v33, 1 }
 0x36e   : > { %vm2082_vm9 = vcmp.eq.s32.totalorder %v2068_v8, 1  ;;  %p3089_p3 = pnand %p3088_p0, %p3082_p11 }
 0x36f   : > { %vm2083_vm3 = vcmp.eq.s32.totalorder %v2072_v34, 1  ;;  %vm2084_vm0 = vcmp.eq.s32.totalorder %v2076_v60, 1 }
 0x402   : > { %v1693_v13 = vpop.f32.mrb[0].mxu0 }
 0x403   : > { %v2085_v42 = vsel %vm2077_vm7, %v1693_v13, 0.0  ;;  %v1695_v44 = vpop.f32.mrb[1].mxu0 }
 0x404   : > { %2093 = vst [vmem:[%s4300_s9] sm:$0xff] %v2085_v42  ;;  %v1764_v49 = vpop.f32.mrb[0].mxu1  ;;  %v2086_v38 = vsel %vm2078_vm15, %v1695_v44, 0.0 }
 0x405   : > { %v2087_v54 = vsel %vm2079_vm8, %v1764_v49, 0.0  ;;  %2094 = vst [vmem:[%s4300_s9 + $0x8] sm:$0xff] %v2086_v38  ;;  %v1766_v26 = vpop.f32.mrb[1].mxu1 }
 0x406   : > { %2095 = vst [vmem:[%s4300_s9 + $0x10] sm:$0xff] %v2087_v54  ;;  %v2088_v32 = vsel %vm2080_vm2, %v1766_v26, 0.0  ;;  %v1835_v23 = vpop.f32.mrb[2].mxu0 }
 0x407   : > { %2096 = vst [vmem:[%s4300_s9 + $0x18] sm:$0xff] %v2088_v32  ;;  %v2089_v6 = vsel %vm2081_vm4, %v1835_v23, 0.0  ;;  %v1837_v39 = vpop.f32.mrb[3].mxu0 }
 0x408   : > { %2097 = vst [vmem:[%s4300_s9 + $0x20] sm:$0xff] %v2089_v6  ;;  %v1906_v3 = vpop.f32.mrb[2].mxu1  ;;  %v2090_v12 = vsel %vm2082_vm9, %v1837_v39, 0.0 }
 0x409   : > { %v2091_v46 = vsel %vm2083_vm3, %v1906_v3, 0.0  ;;  %2098 = vst [vmem:[%s4300_s9 + $0x28] sm:$0xff] %v2090_v12  ;;  %v1908_v2 = vpop.f32.mrb[3].mxu1 }
 0x40a   : > { %2099 = vst [vmem:[%s4300_s9 + $0x30] sm:$0xff] %v2091_v46  ;;  %v2092_v7 = vsel %vm2084_vm0, %v1908_v2, 0.0 }
 0x40b   : > { %2100 = vst [vmem:[%s4300_s9 + $0x38] sm:$0xff] %v2092_v7 }
 0x40c   : > { %3092 = shalt.err (!%p3089_p3)
}
 0x40d   : > { %s3093_s22 = scalar_lea.hbm %s4315_s21, 1024  ;;  %s3097_s13 = scalar_lea.hbm %s4527_s6, 2048 }
 0x40e   : > { %p3094_p12 = scmp.ne.s32.totalorder %s4315_s21, %s3093_s22  ;;  %p3098_p6 = scmp.lt.u32.totalorder %s4315_s21, %s4527_s6 }
 0x40f   : > { %p3099_p8 = scmp.lt.u32.totalorder %s3097_s13, %s3093_s22  ;;  %p3101_p13 = scmp.lt.u32.totalorder %s3093_s22, %s4315_s21 }
 0x410   : > { %p3095_p2 = pnand %p3094_p12, %p4511_p7 }
 0x411   : > { %p3100_p4 = por %p3099_p8, %p3098_p6 }
 0x412   : > { %p3096_p10 = pneg %p3095_p2 }
 0x413   : > { %p3102_p5 = por %p3101_p13, %p3100_p4 }
 0x415   : > { %p3103_p11 = pnand %p3102_p5, %p3096_p10 }
 0x417   : > { %3106 = shalt.err (!%p3103_p11)
}
 0x418   : > { %2710 = dma.vmem_to_hbm [thread:$0]  (%p4511_p7), %s4317_s0, 1024, %s4315_s21, %s2380_s23  }
 0x419 PF: > { %s4528_s26 = sld [smem:[#allocation21_spill]]  ;;  %s4529_s2 = sld [smem:[#allocation24_spill]] }
 0x41a   : > { %s4530_s10 = sld [smem:[#allocation23_spill]] }
 0x41f   : > { %s2429_s7 = sand.u32 1, %s4528_s26   ;;  %p4531_p9 = scmp.ne.s32.totalorder %s4529_s2, 0 }
 0x420   : > { %p4532_p1 = scmp.ge.s32.totalorder %s4530_s10, 2  ;;  %s2430_s9 = scalar_lea.sflag [#allocation6], %s2429_s7 }
 0x422   : > { %p2735_p0 = pnand %p4532_p1, %p4531_p9 }
 0x424   : > { %3144 = dma.done.wait (!%p2735_p0), %s2430_s9, 1024  }
 0x425   : > { %3146 = vsyncadd (!%p2735_p0), %s2430_s9, 4294966272  ;;  %s2439_s17 = scalar_lea.sflag [#allocation15], %s2429_s7 }
 0x426   : > { %3148 = dma.done.wait (!%p2735_p0), %s2439_s17, 128  }
 0x427   : > { %3150 = vsyncadd (!%p2735_p0), %s2439_s17, 4294967168  ;;  %s26_s29 = sadd.s32 1, %s4530_s10   ;;  %s4533_s11 = sld [smem:[#allocation22_spill]] }
 0x428   : > { %p23_p3 = scmp.ge.s32.totalorder %s26_s29, 4   ;;  %s4534_s26 = sld [smem:[#allocation26_spill]] }
 0x429   : > { %s4535_s0 = sld [smem:[#allocation25_spill]]  ;;  %s4536_s24 = smov %s3157_s25 }
 0x42a   : > { %s4538_s27 = smov %s3169_s28  ;;  %25 = sbr.rel (!%p23_p3) target bundleno = 13 (0xd), region = 156 }
 0x42d   : > { %s4537_s25 = smov %s4533_s11 }
 0x42f   : > { %s4539_s28 = smov %s4535_s0 }
 0x431   :  { %2444 = vsyncpa [#allocation5], 1 }
 0x432   :  { %2446 = vsyncpa [#allocation5 + $0x1], 1 }
 0x433   :  { %2447 = vsyncpa [#allocation8], 1 }
 0x434   :  { %2448 = vsyncpa [#allocation6], 1 }
 0x435   :  { %2450 = vsyncpa [#allocation6 + $0x1], 1 }
 0x436   :  { %2451 = vsyncpa [#allocation15], 1 }
 0x437   :  { %2453 = vsyncpa [#allocation15 + $0x1], 1 }

</bundles_post_ra>
